<compile_context>
chip_gen: v7x
topology: tpu7x:2x2x1
jax: 0.10.0
libtpu: 0.0.40
codegen_flags: <defaults>
</compile_context>

<pallas_src>
import functools

import jax
import jax.numpy as jnp
from jax import lax
from jax.experimental import pallas as pl
from jax.experimental.pallas import tpu as pltpu


def _pick_block(size, target):
    """Largest block <= target that divides `size` (prefer multiples of 128, then 8)."""
    if size <= target:
        return size
    for step in (128, 8):
        b = (target // step) * step
        while b >= step:
            if size % b == 0:
                return b
            b -= step
    return size  # fall back to the full (untiled) axis


# ---------------------------------------------------------------------------
# Shared kernel pieces
# ---------------------------------------------------------------------------

def _init_q_block(q_ref, qs_ref, m_ref, l_ref, acc_ref, *, scale):
    """Runs once per q block: hoist Q scaling + dtype cast, reset the online-softmax state."""
    q = q_ref[...]                                     # (1, rep, 1, block_q, d)
    qf = q.astype(jnp.float32) * scale
    qs_ref[...] = qf.reshape(qs_ref.shape).astype(qs_ref.dtype)
    m_ref[...] = jnp.full(m_ref.shape, -jnp.inf, jnp.float32)
    l_ref[...] = jnp.zeros(l_ref.shape, jnp.float32)
    acc_ref[...] = jnp.zeros(acc_ref.shape, jnp.float32)


def _kv_step(k_ref, v_ref, qs_ref, m_ref, l_ref, acc_ref,
             *, rep, block_q, block_k, mask_thresh):
    """One online-softmax update with a single KV block (optionally causal-masked)."""
    mm_dtype = qs_ref.dtype
    k = k_ref[0, 0]                                    # (block_k, d)
    v = v_ref[0, 0]                                    # (block_k, d)
    qs = qs_ref[...]                                   # (rep*block_q, d), already scaled

    # QK^T via dot_general contracting the last dims; the MXU consumes the RHS minor-dim
    # contraction directly (no materialized K transpose).
    s = lax.dot_general(qs, k.astype(mm_dtype),
                        (((1,), (1,)), ((), ())),
                        preferred_element_type=jnp.float32)   # (rep*block_q, block_k) f32

    if mask_thresh is not None:
        # create_causal_mask semantics: masked iff col_global > row_global + (j - i).
        # Rewritten as (col_local - row_local) > scalar_threshold so the per-element work
        # is a single compare; only diagonal-straddling blocks reach this branch.
        mask_value = -jnp.finfo(jnp.float32).max
        col = lax.broadcasted_iota(jnp.int32, (block_q, block_k), 1)
        row = lax.broadcasted_iota(jnp.int32, (block_q, block_k), 0)
        masked = (col - row) > mask_thresh
        s = s.reshape(rep, block_q, block_k)
        s = jnp.where(masked[None], mask_value, s)
        s = s.reshape(rep * block_q, block_k)

    # Online softmax in f32 (matches the PyTorch attn_fn dtype=float32).
    m_prev = m_ref[...]                                        # (rep*block_q, 1)
    m_new = jnp.maximum(m_prev, jnp.max(s, axis=-1, keepdims=True))
    alpha = jnp.exp(m_prev - m_new)
    p = jnp.exp(s - m_new)
    l_ref[...] = alpha * l_ref[...] + jnp.sum(p, axis=-1, keepdims=True)
    # Match the PyTorch module: softmax weights are cast back to the matmul dtype before
    # the PV contraction (f32 accumulation on the MXU).
    pv = jnp.dot(p.astype(mm_dtype), v.astype(mm_dtype),
                 preferred_element_type=jnp.float32)
    acc_ref[...] = alpha * acc_ref[...] + pv
    m_ref[...] = m_new


def _finalize_q_block(o_ref, l_ref, acc_ref):
    # Exact divide: runs once per q block, cost is negligible, bit-parity with a plain softmax.
    inv = 1.0 / l_ref[...]
    o_ref[...] = (acc_ref[...] * inv).astype(o_ref.dtype).reshape(o_ref.shape)


# ---------------------------------------------------------------------------
# Kernels
# ---------------------------------------------------------------------------

def _flash_attend_kernel_causal(qi_tbl, ki_tbl, last_tbl,
                                q_ref, k_ref, v_ref, o_ref,
                                qs_ref, m_ref, l_ref, acc_ref,
                                *, scale, rep, block_q, block_k, offset):
    """Causal (j >= n) path over a flattened triangular grid of live (qi, ki) pairs."""
    t = pl.program_id(2)
    qi = qi_tbl[t]
    ki = ki_tbl[t]

    @pl.when(ki == 0)
    def _init():
        _init_q_block(q_ref, qs_ref, m_ref, l_ref, acc_ref, scale=scale)

    # Only blocks straddling the diagonal need the element-wise mask.
    needs_mask = ki * block_k + (block_k - 1) > qi * block_q + offset
    thresh = qi * block_q - ki * block_k + offset

    @pl.when(jnp.logical_not(needs_mask))
    def _interior():
        _kv_step(k_ref, v_ref, qs_ref, m_ref, l_ref, acc_ref,
                 rep=rep, block_q=block_q, block_k=block_k, mask_thresh=None)

    @pl.when(needs_mask)
    def _diagonal():
        _kv_step(k_ref, v_ref, qs_ref, m_ref, l_ref, acc_ref,
                 rep=rep, block_q=block_q, block_k=block_k, mask_thresh=thresh)

    @pl.when(last_tbl[t] == 1)
    def _finalize():
        _finalize_q_block(o_ref, l_ref, acc_ref)


def _flash_attend_kernel_rect(q_ref, k_ref, v_ref, o_ref,
                              qs_ref, m_ref, l_ref, acc_ref,
                              *, scale, rep, block_q, block_k, offset, causal):
    """Non-causal path, and degenerate causal (j < n) path, over the full rectangular grid."""
    qi = pl.program_id(2)
    ki = pl.program_id(3)
    num_k = pl.num_programs(3)

    @pl.when(ki == 0)
    def _init():
        _init_q_block(q_ref, qs_ref, m_ref, l_ref, acc_ref, scale=scale)

    if causal:
        # j < n: process every block and apply the -finfo.max mask where needed, so
        # fully-masked rows end up with uniform weights over all of J, exactly like torch.
        needs_mask = ki * block_k + (block_k - 1) > qi * block_q + offset
        thresh = qi * block_q - ki * block_k + offset

        @pl.when(jnp.logical_not(needs_mask))
        def _interior():
            _kv_step(k_ref, v_ref, qs_ref, m_ref, l_ref, acc_ref,
                     rep=rep, block_q=block_q, block_k=block_k, mask_thresh=None)

        @pl.when(needs_mask)
        def _masked():
            _kv_step(k_ref, v_ref, qs_ref, m_ref, l_ref, acc_ref,
                     rep=rep, block_q=block_q, block_k=block_k, mask_thresh=thresh)
    else:
        _kv_step(k_ref, v_ref, qs_ref, m_ref, l_ref, acc_ref,
                 rep=rep, block_q=block_q, block_k=block_k, mask_thresh=None)

    @pl.when(ki == num_k - 1)
    def _finalize():
        _finalize_q_block(o_ref, l_ref, acc_ref)


# ---------------------------------------------------------------------------
# Wrapper
# ---------------------------------------------------------------------------

def attend(q, k, v, *, scale=None, causal=False,
           block_q=None, block_k=None,
           bf16_matmul=None, vmem_limit_bytes=None):
    """Pallas flash-attention implementation of Attend.forward
    (mask=None, attn_bias=None, dropout=0).

    q: [B, H, N, D]; k, v: [B, KVH, J, D] with H % KVH == 0.
    bf16_matmul=None (default) auto-enables bf16 MXU matmuls for f32 inputs.
    """
    b, h, n, d = q.shape
    kb, kv_h, j, kd = k.shape
    assert kb == b and kd == d and v.shape == k.shape
    assert h % kv_h == 0, "heads must be a multiple of kv_heads"
    rep = h // kv_h

    if scale is None:
        scale = d ** (-0.5)

    if bf16_matmul is None:
        bf16_matmul = (q.dtype == jnp.float32)
    mm_dtype = jnp.bfloat16 if (bf16_matmul and q.dtype == jnp.float32) else q.dtype

    if block_q is None:
        # Target ~512-1024 folded query rows (rep * block_q) per tile.
        block_q = _pick_block(n, max(min(1024 // rep, 512), 16))
    if block_k is None:
        block_k = _pick_block(j, 512)
    assert n % block_q == 0 and j % block_k == 0

    num_q = n // block_q
    num_k = j // block_k
    offset = j - n

    # Module uses einops repeat 'b kvh n d -> b (r kvh) n d': query head h <-> kv head
    # h % kv_h.  Splitting H as (rep, kv_h) is a free reshape; no transpose, no K/V copy.
    q5 = q.reshape(b, rep, kv_h, n, d)
    out_shape = jax.ShapeDtypeStruct((b, rep, kv_h, n, d), q.dtype)

    q_block = (1, rep, 1, block_q, d)
    kv_block = (1, 1, block_k, d)

    scratch_shapes = [
        pltpu.VMEM((rep * block_q, d), mm_dtype),      # scaled / cast Q (hoisted out of KV loop)
        pltpu.VMEM((rep * block_q, 1), jnp.float32),   # running max
        pltpu.VMEM((rep * block_q, 1), jnp.float32),   # running denominator
        pltpu.VMEM((rep * block_q, d), jnp.float32),   # output accumulator
    ]

    if causal and offset >= 0:
        # --- triangular grid: enumerate only live (qi, ki) blocks ---------------------
        qi_list, ki_list, last_list = [], [], []
        for qi in range(num_q):
            last_live = min((qi * block_q + block_q - 1 + offset) // block_k, num_k - 1)
            for ki in range(last_live + 1):
                qi_list.append(qi)
                ki_list.append(ki)
                last_list.append(1 if ki == last_live else 0)
        qi_tbl = jnp.asarray(qi_list, dtype=jnp.int32)
        ki_tbl = jnp.asarray(ki_list, dtype=jnp.int32)
        last_tbl = jnp.asarray(last_list, dtype=jnp.int32)
        num_steps = len(qi_list)

        def q_index(bi, hi, t, qt, kt, lt):
            return (bi, 0, hi, qt[t], 0)

        def kv_index(bi, hi, t, qt, kt, lt):
            return (bi, hi, kt[t], 0)

        def o_index(bi, hi, t, qt, kt, lt):
            return (bi, 0, hi, qt[t], 0)

        kernel = functools.partial(
            _flash_attend_kernel_causal, scale=scale, rep=rep,
            block_q=block_q, block_k=block_k, offset=offset)

        out5 = pl.pallas_call(
            kernel,
            out_shape=out_shape,
            grid_spec=pltpu.PrefetchScalarGridSpec(
                num_scalar_prefetch=3,
                grid=(b, kv_h, num_steps),
                in_specs=[
                    pl.BlockSpec(q_block, q_index),
                    pl.BlockSpec(kv_block, kv_index),
                    pl.BlockSpec(kv_block, kv_index),
                ],
                out_specs=pl.BlockSpec(q_block, o_index),
                scratch_shapes=scratch_shapes,
            ),
            compiler_params=pltpu.CompilerParams(
                dimension_semantics=("parallel", "parallel", "arbitrary"),
                vmem_limit_bytes=vmem_limit_bytes,
            ),
        )(qi_tbl, ki_tbl, last_tbl, q5, k, v)
    else:
        # --- rectangular grid (non-causal, or degenerate causal j < n) ----------------
        def q_index(bi, hi, qi, ki):
            return (bi, 0, hi, qi, 0)

        def kv_index(bi, hi, qi, ki):
            return (bi, hi, ki, 0)

        def o_index(bi, hi, qi, ki):
            return (bi, 0, hi, qi, 0)

        kernel = functools.partial(
            _flash_attend_kernel_rect, scale=scale, rep=rep,
            block_q=block_q, block_k=block_k, offset=offset, causal=causal)

        out5 = pl.pallas_call(
            kernel,
            out_shape=out_shape,
            grid_spec=pltpu.PrefetchScalarGridSpec(
                num_scalar_prefetch=0,
                grid=(b, kv_h, num_q, num_k),
                in_specs=[
                    pl.BlockSpec(q_block, q_index),
                    pl.BlockSpec(kv_block, kv_index),
                    pl.BlockSpec(kv_block, kv_index),
                ],
                out_specs=pl.BlockSpec(q_block, o_index),
                scratch_shapes=scratch_shapes,
            ),
            compiler_params=pltpu.CompilerParams(
                dimension_semantics=("parallel", "parallel", "parallel", "arbitrary"),
                vmem_limit_bytes=vmem_limit_bytes,
            ),
        )(q5, k, v)

    return out5.reshape(b, h, n, d)


# ---------------------------------------------------------------------------
# Pure-JAX reference (mirrors the PyTorch module's default forward path)
# ---------------------------------------------------------------------------

def _attend_reference(q, k, v, *, scale=None, causal=False):
    b, h, n, d = q.shape
    _, kv_h, j, _ = k.shape
    if scale is None:
        scale = d ** (-0.5)
    if kv_h != h:
        rep = h // kv_h
        # einops repeat 'b kvh n d -> b (r kvh) n d' == tile (kv head = h % kv_h).
        k = jnp.tile(k, (1, rep, 1, 1))
        v = jnp.tile(v, (1, rep, 1, 1))
    dots = (jnp.einsum("bhid,bhjd->bhij", q, k) * scale).astype(jnp.float32)
    if causal:
        row = jnp.arange(n)[:, None]
        col = jnp.arange(j)[None, :]
        cmask = col > (row + (j - n))
        dots = jnp.where(cmask, -jnp.finfo(jnp.float32).max, dots)
    attn = jax.nn.softmax(dots, axis=-1).astype(q.dtype)
    return jnp.einsum("bhij,bhjd->bhid", attn, v)


if __name__ == "__main__":
    key = jax.random.PRNGKey(0)
    kq, kk, kv_key = jax.random.split(key, 3)

    # Small shapes, but with several q/kv blocks so the online softmax, the triangular
    # causal grid, the GQA head folding and the diagonal masking are all exercised.
    B, H, KVH, N, J, D = 2, 4, 2, 32, 32, 32
    q = jax.random.normal(kq, (B, H, N, D), dtype=jnp.float32)
    k = jax.random.normal(kk, (B, KVH, J, D), dtype=jnp.float32)
    v = jax.random.normal(kv_key, (B, KVH, J, D), dtype=jnp.float32)

    ref_causal = _attend_reference(q, k, v, causal=True)
    ref_full = _attend_reference(q, k, v, causal=False)

    # 1) causal, triangular grid, GQA folding, default bf16 MXU path.
    out = jax.block_until_ready(attend(q, k, v, causal=True, block_q=8, block_k=8))
    assert out.shape == (B, H, N, D)
    assert jnp.allclose(out, ref_causal, atol=5e-2, rtol=5e-2), "causal (bf16) mismatch"

    # 2) causal, exact f32 matmul path (tight tolerance).
    out = jax.block_until_ready(
        attend(q, k, v, causal=True, block_q=8, block_k=8, bf16_matmul=False))
    assert jnp.allclose(out, ref_causal, atol=1e-3, rtol=1e-3), "causal (f32) mismatch"

    # 3) causal with default block sizes (single-block smoke test).
    out = jax.block_until_ready(attend(q, k, v, causal=True))
    assert jnp.allclose(out, ref_causal, atol=5e-2, rtol=5e-2), "causal (default blocks) mismatch"

    # 4) non-causal, rectangular grid.
    out = jax.block_until_ready(
        attend(q, k, v, causal=False, block_q=8, block_k=8, bf16_matmul=False))
    assert jnp.allclose(out, ref_full, atol=1e-3, rtol=1e-3), "non-causal mismatch"

    # 5) causal with j > n (offset > 0) and MQA (kv_heads == 1).
    q2 = jax.random.normal(jax.random.PRNGKey(1), (B, H, 24, D), dtype=jnp.float32)
    k2 = jax.random.normal(jax.random.PRNGKey(2), (B, 1, J, D), dtype=jnp.float32)
    v2 = jax.random.normal(jax.random.PRNGKey(3), (B, 1, J, D), dtype=jnp.float32)
    out = jax.block_until_ready(
        attend(q2, k2, v2, causal=True, block_q=8, block_k=8, bf16_matmul=False))
    ref2 = _attend_reference(q2, k2, v2, causal=True)
    assert jnp.allclose(out, ref2, atol=1e-3, rtol=1e-3), "causal offset>0 / MQA mismatch"

    print("KERNEL_OK")
</pallas_src>

<mosaic_0001>
module attributes {stable_mosaic.version = 11 : i64} {
  func.func @_flash_attend_kernel_causal(%arg0: i32, %arg1: i32, %arg2: i32, %arg3: memref<10xi32, #tpu.memory_space<smem>>, %arg4: memref<10xi32, #tpu.memory_space<smem>>, %arg5: memref<10xi32, #tpu.memory_space<smem>>, %arg6: memref<1x2x1x8x32xf32, #tpu.memory_space<vmem>>, %arg7: memref<1x1x8x32xf32, #tpu.memory_space<vmem>>, %arg8: memref<1x1x8x32xf32, #tpu.memory_space<vmem>>, %arg9: memref<1x2x1x8x32xf32, #tpu.memory_space<vmem>>, %arg10: memref<16x32xbf16, #tpu.memory_space<vmem>>, %arg11: memref<16x1xf32, #tpu.memory_space<vmem>>, %arg12: memref<16x1xf32, #tpu.memory_space<vmem>>, %arg13: memref<16x32xf32, #tpu.memory_space<vmem>>) attributes {dimension_semantics = [#tpu.dimension_semantics<parallel>, #tpu.dimension_semantics<parallel>, #tpu.dimension_semantics<arbitrary>], iteration_bounds = array<i64: 2, 2, 10>, scalar_prefetch = 3 : i64, scratch_operands = 4 : i64, tpu.core_type = #tpu.core_type<tc>, window_params = [{transform_indices = @transform_0, window_bounds = array<i64: 1, 2, 1, 8, 32>}, {transform_indices = @transform_1, window_bounds = array<i64: 1, 1, 8, 32>}, {transform_indices = @transform_2, window_bounds = array<i64: 1, 1, 8, 32>}, {transform_indices = @transform_3, window_bounds = array<i64: 1, 2, 1, 8, 32>}]} {
    %0 = arith.index_cast %arg2 : i32 to index
    %1 = memref.load %arg3[%0] : memref<10xi32, #tpu.memory_space<smem>>
    %2 = arith.index_cast %arg2 : i32 to index
    %3 = memref.load %arg4[%2] : memref<10xi32, #tpu.memory_space<smem>>
    %c0_i32 = arith.constant 0 : i32
    %4 = arith.cmpi eq, %3, %c0_i32 : i32
    %5 = arith.extui %4 : i1 to i32
    %c0_i32_0 = arith.constant 0 : i32
    %6 = arith.cmpi ne, %5, %c0_i32_0 : i32
    scf.if %6 {
      %c0 = arith.constant 0 : index
      %c0_9 = arith.constant 0 : index
      %c0_10 = arith.constant 0 : index
      %c0_11 = arith.constant 0 : index
      %c0_12 = arith.constant 0 : index
      %26 = vector.load %arg6[%c0, %c0_9, %c0_10, %c0_11, %c0_12] : memref<1x2x1x8x32xf32, #tpu.memory_space<vmem>>, vector<1x2x1x8x32xf32>
      %cst = arith.constant 0.176776692 : f32
      %27 = vector.broadcast %cst : f32 to vector<1x2x1x8x32xf32>
      %28 = arith.mulf %26, %27 : vector<1x2x1x8x32xf32>
      %29 = vector.shape_cast %28 : vector<1x2x1x8x32xf32> to vector<16x32xf32>
      %30 = arith.truncf %29 : vector<16x32xf32> to vector<16x32xbf16>
      %c0_13 = arith.constant 0 : index
      %c0_14 = arith.constant 0 : index
      %31 = vector.load %arg10[%c0_13, %c0_14] : memref<16x32xbf16, #tpu.memory_space<vmem>>, vector<16x32xbf16>
      tpu.vector_store %arg10[%c0_13, %c0_14], %30 {strides = array<i32>} : memref<16x32xbf16, #tpu.memory_space<vmem>>, vector<16x32xbf16>,
      %cst_15 = arith.constant 0xFF800000 : f32
      %32 = vector.broadcast %cst_15 : f32 to vector<16x1xf32>
      %c0_16 = arith.constant 0 : index
      %c0_17 = arith.constant 0 : index
      %33 = vector.load %arg11[%c0_16, %c0_17] : memref<16x1xf32, #tpu.memory_space<vmem>>, vector<16x1xf32>
      tpu.vector_store %arg11[%c0_16, %c0_17], %32 {strides = array<i32>} : memref<16x1xf32, #tpu.memory_space<vmem>>, vector<16x1xf32>,
      %cst_18 = arith.constant 0.000000e+00 : f32
      %34 = vector.broadcast %cst_18 : f32 to vector<16x1xf32>
      %c0_19 = arith.constant 0 : index
      %c0_20 = arith.constant 0 : index
      %35 = vector.load %arg12[%c0_19, %c0_20] : memref<16x1xf32, #tpu.memory_space<vmem>>, vector<16x1xf32>
      tpu.vector_store %arg12[%c0_19, %c0_20], %34 {strides = array<i32>} : memref<16x1xf32, #tpu.memory_space<vmem>>, vector<16x1xf32>,
      %cst_21 = arith.constant 0.000000e+00 : f32
      %36 = vector.broadcast %cst_21 : f32 to vector<16x32xf32>
      %c0_22 = arith.constant 0 : index
      %c0_23 = arith.constant 0 : index
      %37 = vector.load %arg13[%c0_22, %c0_23] : memref<16x32xf32, #tpu.memory_space<vmem>>, vector<16x32xf32>
      tpu.vector_store %arg13[%c0_22, %c0_23], %36 {strides = array<i32>} : memref<16x32xf32, #tpu.memory_space<vmem>>, vector<16x32xf32>,
    } else {
    }
    %c8_i32 = arith.constant 8 : i32
    %7 = arith.muli %3, %c8_i32 : i32
    %c7_i32 = arith.constant 7 : i32
    %8 = arith.addi %7, %c7_i32 : i32
    %c8_i32_1 = arith.constant 8 : i32
    %9 = arith.muli %1, %c8_i32_1 : i32
    %c0_i32_2 = arith.constant 0 : i32
    %10 = arith.addi %9, %c0_i32_2 : i32
    %11 = arith.cmpi sgt, %8, %10 : i32
    %c8_i32_3 = arith.constant 8 : i32
    %12 = arith.muli %1, %c8_i32_3 : i32
    %c8_i32_4 = arith.constant 8 : i32
    %13 = arith.muli %3, %c8_i32_4 : i32
    %14 = arith.subi %12, %13 : i32
    %c0_i32_5 = arith.constant 0 : i32
    %15 = arith.addi %14, %c0_i32_5 : i32
    %true = arith.constant true
    %16 = arith.xori %11, %true : i1
    %17 = arith.extui %16 : i1 to i32
    %c0_i32_6 = arith.constant 0 : i32
    %18 = arith.cmpi ne, %17, %c0_i32_6 : i32
    scf.if %18 {
      %c0 = arith.constant 0 : index
      %c0_9 = arith.constant 0 : index
      %c0_10 = arith.constant 0 : index
      %c0_11 = arith.constant 0 : index
      %26 = vector.load %arg7[%c0, %c0_9, %c0_10, %c0_11] : memref<1x1x8x32xf32, #tpu.memory_space<vmem>>, vector<1x1x8x32xf32>
      %27 = vector.shape_cast %26 : vector<1x1x8x32xf32> to vector<8x32xf32>
      %c0_12 = arith.constant 0 : index
      %c0_13 = arith.constant 0 : index
      %c0_14 = arith.constant 0 : index
      %c0_15 = arith.constant 0 : index
      %28 = vector.load %arg8[%c0_12, %c0_13, %c0_14, %c0_15] : memref<1x1x8x32xf32, #tpu.memory_space<vmem>>, vector<1x1x8x32xf32>
      %29 = vector.shape_cast %28 : vector<1x1x8x32xf32> to vector<8x32xf32>
      %c0_16 = arith.constant 0 : index
      %c0_17 = arith.constant 0 : index
      %30 = vector.load %arg10[%c0_16, %c0_17] : memref<16x32xbf16, #tpu.memory_space<vmem>>, vector<16x32xbf16>
      %31 = arith.truncf %27 : vector<8x32xf32> to vector<8x32xbf16>
      %cst = arith.constant dense<0.000000e+00> : vector<16x8xf32>
      %32 = tpu.matmul %30, %31, %cst {dimension_numbers = #tpu.dot_dimension_numbers<[1], [1], [0], [0], [0, 0, 1, 0], [], []>} : vector<16x32xbf16>, vector<8x32xbf16>, vector<16x8xf32> -> vector<16x8xf32>
      %c0_18 = arith.constant 0 : index
      %c0_19 = arith.constant 0 : index
      %33 = vector.load %arg11[%c0_18, %c0_19] : memref<16x1xf32, #tpu.memory_space<vmem>>, vector<16x1xf32>
      %cst_20 = arith.constant dense<0xFF800000> : vector<16xf32>
      %34 = vector.multi_reduction <maximumf>, %32, %cst_20 [1] : vector<16x8xf32> to vector<16xf32>
      %35 = vector.shape_cast %34 : vector<16xf32> to vector<16x1xf32>
      %36 = arith.maximumf %33, %35 : vector<16x1xf32>
      %37 = arith.subf %33, %36 : vector<16x1xf32>
      %38 = math.exp %37 : vector<16x1xf32>
      %39 = vector.broadcast %36 : vector<16x1xf32> to vector<16x8xf32>
      %40 = arith.subf %32, %39 : vector<16x8xf32>
      %41 = math.exp %40 : vector<16x8xf32>
      %c0_21 = arith.constant 0 : index
      %c0_22 = arith.constant 0 : index
      %42 = vector.load %arg12[%c0_21, %c0_22] : memref<16x1xf32, #tpu.memory_space<vmem>>, vector<16x1xf32>
      %43 = arith.mulf %38, %42 : vector<16x1xf32>
      %cst_23 = arith.constant dense<0.000000e+00> : vector<16xf32>
      %44 = vector.multi_reduction <add>, %41, %cst_23 [1] : vector<16x8xf32> to vector<16xf32>
      %45 = vector.shape_cast %44 : vector<16xf32> to vector<16x1xf32>
      %46 = arith.addf %43, %45 : vector<16x1xf32>
      %c0_24 = arith.constant 0 : index
      %c0_25 = arith.constant 0 : index
      %47 = vector.load %arg12[%c0_24, %c0_25] : memref<16x1xf32, #tpu.memory_space<vmem>>, vector<16x1xf32>
      tpu.vector_store %arg12[%c0_24, %c0_25], %46 {strides = array<i32>} : memref<16x1xf32, #tpu.memory_space<vmem>>, vector<16x1xf32>,
      %48 = arith.truncf %41 : vector<16x8xf32> to vector<16x8xbf16>
      %49 = arith.truncf %29 : vector<8x32xf32> to vector<8x32xbf16>
      %cst_26 = arith.constant dense<0.000000e+00> : vector<16x32xf32>
      %50 = tpu.matmul %48, %49, %cst_26 {dimension_numbers = #tpu.dot_dimension_numbers<[1], [0], [0], [1], [0, 0, 1, 1], [], []>} : vector<16x8xbf16>, vector<8x32xbf16>, vector<16x32xf32> -> vector<16x32xf32>
      %c0_27 = arith.constant 0 : index
      %c0_28 = arith.constant 0 : index
      %51 = vector.load %arg13[%c0_27, %c0_28] : memref<16x32xf32, #tpu.memory_space<vmem>>, vector<16x32xf32>
      %52 = vector.broadcast %38 : vector<16x1xf32> to vector<16x32xf32>
      %53 = arith.mulf %52, %51 : vector<16x32xf32>
      %54 = arith.addf %53, %50 : vector<16x32xf32>
      %c0_29 = arith.constant 0 : index
      %c0_30 = arith.constant 0 : index
      %55 = vector.load %arg13[%c0_29, %c0_30] : memref<16x32xf32, #tpu.memory_space<vmem>>, vector<16x32xf32>
      tpu.vector_store %arg13[%c0_29, %c0_30], %54 {strides = array<i32>} : memref<16x32xf32, #tpu.memory_space<vmem>>, vector<16x32xf32>,
      %c0_31 = arith.constant 0 : index
      %c0_32 = arith.constant 0 : index
      %56 = vector.load %arg11[%c0_31, %c0_32] : memref<16x1xf32, #tpu.memory_space<vmem>>, vector<16x1xf32>
      tpu.vector_store %arg11[%c0_31, %c0_32], %36 {strides = array<i32>} : memref<16x1xf32, #tpu.memory_space<vmem>>, vector<16x1xf32>,
    } else {
    }
    %19 = arith.extui %11 : i1 to i32
    %c0_i32_7 = arith.constant 0 : i32
    %20 = arith.cmpi ne, %19, %c0_i32_7 : i32
    scf.if %20 {
      %c0 = arith.constant 0 : index
      %c0_9 = arith.constant 0 : index
      %c0_10 = arith.constant 0 : index
      %c0_11 = arith.constant 0 : index
      %26 = vector.load %arg7[%c0, %c0_9, %c0_10, %c0_11] : memref<1x1x8x32xf32, #tpu.memory_space<vmem>>, vector<1x1x8x32xf32>
      %27 = vector.shape_cast %26 : vector<1x1x8x32xf32> to vector<8x32xf32>
      %c0_12 = arith.constant 0 : index
      %c0_13 = arith.constant 0 : index
      %c0_14 = arith.constant 0 : index
      %c0_15 = arith.constant 0 : index
      %28 = vector.load %arg8[%c0_12, %c0_13, %c0_14, %c0_15] : memref<1x1x8x32xf32, #tpu.memory_space<vmem>>, vector<1x1x8x32xf32>
      %29 = vector.shape_cast %28 : vector<1x1x8x32xf32> to vector<8x32xf32>
      %c0_16 = arith.constant 0 : index
      %c0_17 = arith.constant 0 : index
      %30 = vector.load %arg10[%c0_16, %c0_17] : memref<16x32xbf16, #tpu.memory_space<vmem>>, vector<16x32xbf16>
      %31 = arith.truncf %27 : vector<8x32xf32> to vector<8x32xbf16>
      %cst = arith.constant dense<0.000000e+00> : vector<16x8xf32>
      %32 = tpu.matmul %30, %31, %cst {dimension_numbers = #tpu.dot_dimension_numbers<[1], [1], [0], [0], [0, 0, 1, 0], [], []>} : vector<16x32xbf16>, vector<8x32xbf16>, vector<16x8xf32> -> vector<16x8xf32>
      %33 = tpu.iota {dimensions = array<i32: 1>} : vector<8x8xi32>
      %34 = tpu.iota {dimensions = array<i32: 0>} : vector<8x8xi32>
      %35 = arith.subi %33, %34 : vector<8x8xi32>
      %36 = vector.broadcast %15 : i32 to vector<8x8xi32>
      %37 = arith.cmpi sgt, %35, %36 : vector<8x8xi32>
      %38 = vector.shape_cast %32 : vector<16x8xf32> to vector<2x8x8xf32>
      %39 = vector.shape_cast %37 : vector<8x8xi1> to vector<1x8x8xi1>
      %cst_18 = arith.constant -3.40282347E+38 : f32
      %40 = vector.shape_cast %39 : vector<1x8x8xi1> to vector<1x8x8xi1>
      %41 = vector.broadcast %40 : vector<1x8x8xi1> to vector<2x8x8xi1>
      %42 = vector.broadcast %cst_18 : f32 to vector<2x8x8xf32>
      %43 = arith.select %41, %42, %38 : vector<2x8x8xi1>, vector<2x8x8xf32>
      %44 = vector.shape_cast %43 : vector<2x8x8xf32> to vector<16x8xf32>
      %c0_19 = arith.constant 0 : index
      %c0_20 = arith.constant 0 : index
      %45 = vector.load %arg11[%c0_19, %c0_20] : memref<16x1xf32, #tpu.memory_space<vmem>>, vector<16x1xf32>
      %cst_21 = arith.constant dense<0xFF800000> : vector<16xf32>
      %46 = vector.multi_reduction <maximumf>, %44, %cst_21 [1] : vector<16x8xf32> to vector<16xf32>
      %47 = vector.shape_cast %46 : vector<16xf32> to vector<16x1xf32>
      %48 = arith.maximumf %45, %47 : vector<16x1xf32>
      %49 = arith.subf %45, %48 : vector<16x1xf32>
      %50 = math.exp %49 : vector<16x1xf32>
      %51 = vector.broadcast %48 : vector<16x1xf32> to vector<16x8xf32>
      %52 = arith.subf %44, %51 : vector<16x8xf32>
      %53 = math.exp %52 : vector<16x8xf32>
      %c0_22 = arith.constant 0 : index
      %c0_23 = arith.constant 0 : index
      %54 = vector.load %arg12[%c0_22, %c0_23] : memref<16x1xf32, #tpu.memory_space<vmem>>, vector<16x1xf32>
      %55 = arith.mulf %50, %54 : vector<16x1xf32>
      %cst_24 = arith.constant dense<0.000000e+00> : vector<16xf32>
      %56 = vector.multi_reduction <add>, %53, %cst_24 [1] : vector<16x8xf32> to vector<16xf32>
      %57 = vector.shape_cast %56 : vector<16xf32> to vector<16x1xf32>
      %58 = arith.addf %55, %57 : vector<16x1xf32>
      %c0_25 = arith.constant 0 : index
      %c0_26 = arith.constant 0 : index
      %59 = vector.load %arg12[%c0_25, %c0_26] : memref<16x1xf32, #tpu.memory_space<vmem>>, vector<16x1xf32>
      tpu.vector_store %arg12[%c0_25, %c0_26], %58 {strides = array<i32>} : memref<16x1xf32, #tpu.memory_space<vmem>>, vector<16x1xf32>,
      %60 = arith.truncf %53 : vector<16x8xf32> to vector<16x8xbf16>
      %61 = arith.truncf %29 : vector<8x32xf32> to vector<8x32xbf16>
      %cst_27 = arith.constant dense<0.000000e+00> : vector<16x32xf32>
      %62 = tpu.matmul %60, %61, %cst_27 {dimension_numbers = #tpu.dot_dimension_numbers<[1], [0], [0], [1], [0, 0, 1, 1], [], []>} : vector<16x8xbf16>, vector<8x32xbf16>, vector<16x32xf32> -> vector<16x32xf32>
      %c0_28 = arith.constant 0 : index
      %c0_29 = arith.constant 0 : index
      %63 = vector.load %arg13[%c0_28, %c0_29] : memref<16x32xf32, #tpu.memory_space<vmem>>, vector<16x32xf32>
      %64 = vector.broadcast %50 : vector<16x1xf32> to vector<16x32xf32>
      %65 = arith.mulf %64, %63 : vector<16x32xf32>
      %66 = arith.addf %65, %62 : vector<16x32xf32>
      %c0_30 = arith.constant 0 : index
      %c0_31 = arith.constant 0 : index
      %67 = vector.load %arg13[%c0_30, %c0_31] : memref<16x32xf32, #tpu.memory_space<vmem>>, vector<16x32xf32>
      tpu.vector_store %arg13[%c0_30, %c0_31], %66 {strides = array<i32>} : memref<16x32xf32, #tpu.memory_space<vmem>>, vector<16x32xf32>,
      %c0_32 = arith.constant 0 : index
      %c0_33 = arith.constant 0 : index
      %68 = vector.load %arg11[%c0_32, %c0_33] : memref<16x1xf32, #tpu.memory_space<vmem>>, vector<16x1xf32>
      tpu.vector_store %arg11[%c0_32, %c0_33], %48 {strides = array<i32>} : memref<16x1xf32, #tpu.memory_space<vmem>>, vector<16x1xf32>,
    } else {
    }
    %21 = arith.index_cast %arg2 : i32 to index
    %22 = memref.load %arg5[%21] : memref<10xi32, #tpu.memory_space<smem>>
    %c1_i32 = arith.constant 1 : i32
    %23 = arith.cmpi eq, %22, %c1_i32 : i32
    %24 = arith.extui %23 : i1 to i32
    %c0_i32_8 = arith.constant 0 : i32
    %25 = arith.cmpi ne, %24, %c0_i32_8 : i32
    scf.if %25 {
      %c0 = arith.constant 0 : index
      %c0_9 = arith.constant 0 : index
      %26 = vector.load %arg12[%c0, %c0_9] : memref<16x1xf32, #tpu.memory_space<vmem>>, vector<16x1xf32>
      %cst = arith.constant 1.000000e+00 : f32
      %27 = vector.broadcast %cst : f32 to vector<16x1xf32>
      %28 = arith.divf %27, %26 : vector<16x1xf32>
      %c0_10 = arith.constant 0 : index
      %c0_11 = arith.constant 0 : index
      %29 = vector.load %arg13[%c0_10, %c0_11] : memref<16x32xf32, #tpu.memory_space<vmem>>, vector<16x32xf32>
      %30 = vector.broadcast %28 : vector<16x1xf32> to vector<16x32xf32>
      %31 = arith.mulf %29, %30 : vector<16x32xf32>
      %32 = vector.shape_cast %31 : vector<16x32xf32> to vector<1x2x1x8x32xf32>
      %c0_12 = arith.constant 0 : index
      %c0_13 = arith.constant 0 : index
      %c0_14 = arith.constant 0 : index
      %c0_15 = arith.constant 0 : index
      %c0_16 = arith.constant 0 : index
      %33 = vector.load %arg9[%c0_12, %c0_13, %c0_14, %c0_15, %c0_16] : memref<1x2x1x8x32xf32, #tpu.memory_space<vmem>>, vector<1x2x1x8x32xf32>
      tpu.vector_store %arg9[%c0_12, %c0_13, %c0_14, %c0_15, %c0_16], %32 {strides = array<i32>} : memref<1x2x1x8x32xf32, #tpu.memory_space<vmem>>, vector<1x2x1x8x32xf32>,
    } else {
    }
    return
  }
  func.func @transform_0(%arg0: i32, %arg1: i32, %arg2: i32, %arg3: memref<10xi32, #tpu.memory_space<smem>>, %arg4: memref<10xi32, #tpu.memory_space<smem>>, %arg5: memref<10xi32, #tpu.memory_space<smem>>) -> (i32, i32, i32, i32, i32) {
    %0 = arith.index_cast %arg2 : i32 to index
    %1 = memref.load %arg3[%0] : memref<10xi32, #tpu.memory_space<smem>>
    %c0_i32 = arith.constant 0 : i32
    %c0_i32_0 = arith.constant 0 : i32
    %c0_i32_1 = arith.constant 0 : i32
    return %arg0, %c0_i32, %arg1, %1, %c0_i32_0 : i32, i32, i32, i32, i32
  }
  func.func @transform_1(%arg0: i32, %arg1: i32, %arg2: i32, %arg3: memref<10xi32, #tpu.memory_space<smem>>, %arg4: memref<10xi32, #tpu.memory_space<smem>>, %arg5: memref<10xi32, #tpu.memory_space<smem>>) -> (i32, i32, i32, i32) {
    %0 = arith.index_cast %arg2 : i32 to index
    %1 = memref.load %arg4[%0] : memref<10xi32, #tpu.memory_space<smem>>
    %c0_i32 = arith.constant 0 : i32
    %c0_i32_0 = arith.constant 0 : i32
    return %arg0, %arg1, %1, %c0_i32 : i32, i32, i32, i32
  }
  func.func @transform_2(%arg0: i32, %arg1: i32, %arg2: i32, %arg3: memref<10xi32, #tpu.memory_space<smem>>, %arg4: memref<10xi32, #tpu.memory_space<smem>>, %arg5: memref<10xi32, #tpu.memory_space<smem>>) -> (i32, i32, i32, i32) {
    %0 = arith.index_cast %arg2 : i32 to index
    %1 = memref.load %arg4[%0] : memref<10xi32, #tpu.memory_space<smem>>
    %c0_i32 = arith.constant 0 : i32
    %c0_i32_0 = arith.constant 0 : i32
    return %arg0, %arg1, %1, %c0_i32 : i32, i32, i32, i32
  }
  func.func @transform_3(%arg0: i32, %arg1: i32, %arg2: i32, %arg3: memref<10xi32, #tpu.memory_space<smem>>, %arg4: memref<10xi32, #tpu.memory_space<smem>>, %arg5: memref<10xi32, #tpu.memory_space<smem>>) -> (i32, i32, i32, i32, i32) {
    %0 = arith.index_cast %arg2 : i32 to index
    %1 = memref.load %arg3[%0] : memref<10xi32, #tpu.memory_space<smem>>
    %c0_i32 = arith.constant 0 : i32
    %c0_i32_0 = arith.constant 0 : i32
    %c0_i32_1 = arith.constant 0 : i32
    return %arg0, %c0_i32, %arg1, %1, %c0_i32_0 : i32, i32, i32, i32, i32
  }
}

</mosaic_0001>

<bundles_post_ra>
// kernel: tpu_custom_call.1
= control target key start
LH: loop header
LB: loop body
LE: loop exit
PB: predicated region body
PF: predicated region fallthrough
CT: control target
= control target key end

     0   :  { %s2198_s0 = inlined_call_operand.hbm [shape: s32[10], index: 0, kind: input, shape index: {}]   ;;  %s2199_s3 = inlined_call_operand.hbm [shape: f32[2,2,2,32,32], index: 3, kind: input, shape index: {}]   ;;  %s2200_s4 = inlined_call_operand.hbm [shape: f32[2,2,32,32], index: 4, kind: input, shape index: {}]   ;;  %s2201_s5 = inlined_call_operand.hbm [shape: f32[2,2,32,32], index: 5, kind: input, shape index: {}]   ;;  %s2202_s6 = inlined_call_operand.hbm [shape: f32[2,2,2,32,32], index: 6, kind: output, shape index: {}]   ;;  %s2203_s1 = inlined_call_operand.vmem [shape: s32[10], index: 1, kind: input, shape index: {}]   ;;  %s2204_s2 = inlined_call_operand.vmem [shape: s32[10], index: 2, kind: input, shape index: {}]  }
   0x1   :  { %2234 = sst [smem:[#allocation52_spill]] %s2202_s6  ;;  %s1217_s23 = scalar_lea.hbm %s2198_s0, 16 }
   0x2   :  { %p1218_p0 = scmp.ne.s32.totalorder %s2198_s0, %s1217_s23  ;;  %p1221_p1 = scmp.lt.u32.totalorder %s1217_s23, %s2198_s0 }
   0x4   :  { %p1223_p2 = pnand %p1221_p1, %p1218_p0 }
   0x6   :  { %1226 = shalt.err (!%p1223_p2)  }
   0x7   :  { %s1539_s28 = smov [#allocation7]   ;;  %s13_s9 = sshll.u32 %s2203_s1, 4  ;;  %s14_s9 = int_to_ptr.vmem [resolvable:$true] %s13_s9 }
   0x8   :  { %12 = dma.hbm_to_smem %s2198_s0, 16, %s1539_s28, [#allocation6] }
   0x9   :  { %s17_s12 = sshll.u32 %s2204_s2, 4  ;;  %s1227_s13 = scalar_lea.vmem %s14_s9, 16  ;;  %s18_s12 = int_to_ptr.vmem [resolvable:$true] %s17_s12 }
   0xa   :  { %p1228_p3 = scmp.ne.s32.totalorder %s14_s9, %s1227_s13  ;;  %p1232_p4 = scmp.lt.s32.totalorder %s14_s9, %s14_s9 }
   0xb   :  { %p1233_p5 = scmp.lt.s32.totalorder %s1227_s13, %s1227_s13 }
   0xd   :  { %p1234_p6 = por %p1233_p5, %p1232_p4 }
   0xf   :  { %p1235_p7 = pnand %p1234_p6, %p1228_p3 }
  0x11   :  { %1238 = shalt.err (!%p1235_p7)  }
  0x12   :  { %s1540_s14 = smov [#allocation8]   ;;  %s1239_s0 = scalar_lea.vmem %s18_s12, 16 }
  0x13   :  { %16 = dma.vmem_to_smem %s14_s9, 16, %s1540_s14, [#allocation6] }
  0x14   :  { %p1240_p8 = scmp.ne.s32.totalorder %s18_s12, %s1239_s0  ;;  %p1244_p9 = scmp.lt.s32.totalorder %s18_s12, %s18_s12 }
  0x15   :  { %p1245_p10 = scmp.lt.s32.totalorder %s1239_s0, %s1239_s0 }
  0x17   :  { %p1246_p11 = por %p1245_p10, %p1244_p9 }
  0x19   :  { %p1247_p12 = pnand %p1246_p11, %p1240_p8 }
  0x1b   :  { %1250 = shalt.err (!%p1247_p12)  }
  0x1c   :  { %s1541_s1 = smov [#allocation9]  }
  0x1d   :  { %20 = dma.vmem_to_smem %s18_s12, 16, %s1541_s1, [#allocation6] }
  0x1e   :  { %1445 = dma.done.wait [#allocation6], 48 }
  0x1f   :  { %1446 = vsyncadd [#allocation6], 4294967248 }
  0x20   :  { %22 = sfence }
  0x21   :  { %23 = vsyncpa [#allocation11], 0 }
  0x22   :  { %25 = vsyncpa [#allocation11 + $0x1], 0 }
  0x23   :  { %26 = vsyncpa [#allocation14], 0 }
  0x24   :  { %28 = vsyncpa [#allocation14 + $0x1], 0 }
  0x25   :  { %29 = vsyncpa [#allocation12], 0 }
  0x26   :  { %31 = vsyncpa [#allocation12 + $0x1], 0  ;;  %s1614_s2 = smov 0   ;;  %s1616_s15 = smov 0  }
  0x27   :  { %s1618_s16 = smov 0   ;;  %s1620_s17 = smov 0  }
  0x28   :  { %s1622_s18 = smov 0   ;;  %s1624_s19 = smov 0  }
  0x29   :  { %s1626_s20 = smov 0   ;;  %s1628_s21 = smov 0  }
  0x2a   :  { %s1630_s22 = smov 0   ;;  %s1632_s23 = smov 0  }
  0x2b   :  { %s1634_s24 = smov 0   ;;  %s1636_s25 = smov 0  }
  0x2c   :  { %s1638_s26 = smov 0   ;;  %s1640_s27 = smov 0  }
  0x2d   :  { %s1642_s28 = smov 0   ;;  %s1644_s29 = smov 0  }
  0x2e   :  { %s1646_s30 = smov 0   ;;  %s1648_s7 = smov 0  }
  0x2f   :  { %s1650_s8 = smov 0  }
  0x30 LB: > { %2235 = sst [smem:[#allocation29_spill]] %s1465_s2  ;;  %s1710_s9 = sadd.s32 4294967295, %s1537_s8   ;;  %s1537_s8 = sphi %s1650_s8, %s37_s8   ;;  %s1533_s7 = sphi %s1648_s7, %s2325_s7   ;;  %s1529_s30 = sphi %s1646_s30, %s2314_s30   ;;  %s1525_s29 = sphi %s1644_s29, %s2324_s29   ;;  %s1521_s28 = sphi %s1642_s28, %s2323_s28   ;;  %s1517_s27 = sphi %s1640_s27, %s2312_s27   ;;  %s1513_s26 = sphi %s1638_s26, %s2311_s26   ;;  %s1509_s25 = sphi %s1636_s25, %s2322_s25   ;;  %s1505_s24 = sphi %s1634_s24, %s2321_s24   ;;  %s1501_s23 = sphi %s1632_s23, %s2320_s23   ;;  %s1497_s22 = sphi %s1630_s22, %s2308_s22   ;;  %s1493_s21 = sphi %s1628_s21, %s2307_s21   ;;  %s1489_s20 = sphi %s1626_s20, %s2306_s20   ;;  %s1485_s19 = sphi %s1624_s19, %s2319_s19   ;;  %s1481_s18 = sphi %s1622_s18, %s2318_s18   ;;  %s1477_s17 = sphi %s1620_s17, %s2316_s17   ;;  %s1473_s16 = sphi %s1618_s16, %s2304_s16   ;;  %s1469_s15 = sphi %s1616_s15, %s2303_s15   ;;  %s1465_s2 = sphi %s1614_s2, %s2302_s2  }
  0x31   : > { %2236 = sst [smem:[#allocation30_spill]] %s1469_s15  ;;  %s49_s11 = sadd.s32 1, %s1525_s29 }
  0x32   : > { %2237 = sst [smem:[#allocation31_spill]] %s1473_s16  ;;  %s52_s12 = sadd.s32 1, %s1529_s30 }
  0x33   : > { %2238 = sst [smem:[#allocation32_spill]] %s1493_s21  ;;  %p50_p13 = scmp.ge.s32.totalorder %s49_s11, 10 }
  0x34   : > { %2239 = sst [smem:[#allocation33_spill]] %s1497_s22  ;;  %s56_s13 = sadd.s32 1, %s1533_s7 }
  0x35   : > { %2240 = sst [smem:[#allocation34_spill]] %s1505_s24  ;;  %s2327_s11 = smov (%p50_p13, %s49_s11), 0 }
  0x36   : > { %2241 = sst [smem:[#allocation35_spill]] %s1513_s26  ;;  %s2329_s12 = smov (!%p50_p13, %s52_s12), %s1529_s30 }
  0x37   : > { %2242 = sst [smem:[#allocation36_spill]] %s1517_s27  ;;  %p76_p0 = scmp.ne.s32.totalorder %s1509_s25, %s1505_s24 }
  0x38   : > { %2243 = sst [smem:[#allocation37_spill]] %s1521_s28  ;;  %p54_p1 = scmp.ge.s32.totalorder %s2329_s12, 2 }
  0x39   : > { %2244 = sst [smem:[#allocation38_spill]] %s1525_s29  ;;  %p77_p2 = scmp.eq.s32.totalorder %s1537_s8, 0 }
  0x3a   : > { %2245 = sst [smem:[#allocation39_spill]] %s1529_s30  ;;  %p82_p3 = scmp.ne.s32.totalorder %s1505_s24, %s1501_s23 }
  0x3b   : > { %s60_s14 = sld [smem:[#allocation7 + %s1525_s29]]  ;;  %p83_p4 = scmp.eq.s32.totalorder %s1710_s9, 0 }
  0x3c   : > { %2246 = sst [smem:[#allocation40_spill]] %s2327_s11  ;;  %s2331_s12 = smov (%p54_p1, %s2329_s12), 0 }
  0x3d   : > { %s61_s1 = sld [smem:[#allocation7 + %s2327_s11]]  ;;  %s2333_s13 = smov (!%p54_p1, %s56_s13), %s1533_s7 }
  0x3e   : > { %2247 = sst [smem:[#allocation41_spill]] %s2331_s12  ;;  %s63_s10 = ssub.s32 %s1529_s30, %s2331_s12 }
  0x3f   : > { %p1735_p5 = por %p77_p2, %p76_p0  ;;  %p58_p6 = scmp.ge.s32.totalorder %s2333_s13, 2 }
  0x40   : > { %p1741_p7 = por %p83_p4, %p82_p3  ;;  %s92_s28 = sld [smem:[#allocation8 + %s1525_s29]] }
  0x41   : > { %s2335_s13 = smov (%p58_p6, %s2333_s13), 0  ;;  %s93_s12 = sld [smem:[#allocation8 + %s2327_s11]] }
  0x42   : > { %s2249_s23 = scalar_select %p1741_p7, 1, 0 }
  0x43   : > { %s65_s6 = ssub.s32 %s60_s14, %s61_s1  ;;  %2251 = sst [smem:[#allocation43_spill]] %s2335_s13 }
  0x44   : > { %2250 = sst [smem:[#allocation42_spill]] %s2249_s23  ;;  %s101_s27 = sadd.s32 1, %s1497_s22 }
  0x45   : > { %s62_s26 = ssub.s32 %s1533_s7, %s2335_s13  ;;  %p108_p8 = scmp.ne.s32.totalorder %s1497_s22, %s1493_s21 }
  0x46   : > { %s1754_s14 = sor.u32 %s63_s10, %s62_s26  ;;  %p114_p9 = scmp.ne.s32.totalorder %s1493_s21, %s1489_s20 }
  0x47   : > { %s66_s1 = sor.u32 %s65_s6, %s1754_s14  ;;  %p1761_p10 = por %p108_p8, %p77_p2 }
  0x48   : > { %p67_p11 = scmp.eq.s32.totalorder %s66_s1, 0  ;;  %p1767_p12 = por %p114_p9, %p83_p4 }
  0x49   : > { %s124_s26 = sld [smem:[#allocation8 + %s1525_s29]]  ;;  %s2255_s24 = sadd.s32 1, %s1509_s25 }
  0x4a   : > { %s2253_s13 = scalar_select %p1767_p12, 1, 0 }
  0x4b   : > { %s125_s10 = sld [smem:[#allocation8 + %s2327_s11]]  ;;  %s97_s6 = ssub.s32 %s92_s28, %s93_s12 }
  0x4c   : > { %2254 = sst [smem:[#allocation44_spill]] %s2253_s13  ;;  %s133_s21 = sadd.s32 1, %s1485_s19 }
  0x4d   : > { %s1776_s20 = scalar_select %p67_p11, %s1509_s25, %s2255_s24  }
  0x4e   : > { %s98_s1 = sor.u32 %s97_s6, %s1754_s14  ;;  %p140_p13 = scmp.ne.s32.totalorder %s1485_s19, %s1481_s18 }
  0x4f   : > { %2256 = sst [smem:[#allocation45_spill]] %s1776_s20  ;;  %p99_p0 = scmp.eq.s32.totalorder %s98_s1, 0 }
  0x50   : > { %p146_p1 = scmp.ne.s32.totalorder %s1481_s18, %s1477_s17  ;;  %p1786_p3 = por %p140_p13, %p77_p2 }
  0x51   : > { %s156_s24 = sld [smem:[#allocation7 + %s1525_s29]]  ;;  %s129_s28 = ssub.s32 %s124_s26, %s125_s10 }
  0x52   : > { %s2257_s13 = scalar_select %p1786_p3, 1, 0 }
  0x53   : > { %s1792_s20 = scalar_select %p99_p0, %s1497_s22, %s101_s27  }
  0x54   : > { %p1796_p6 = por %p146_p1, %p83_p4  ;;  %s130_s6 = sor.u32 %s129_s28, %s1754_s14 }
  0x55   : > { %2258 = sst [smem:[#allocation46_spill]] %s1792_s20  ;;  %p131_p2 = scmp.eq.s32.totalorder %s130_s6, 0 }
  0x56   : > { %s2259_s12 = scalar_select %p1796_p6, 1, 0 }
  0x57   : > { %s157_s17 = sld [smem:[#allocation7 + %s2327_s11]]  ;;  %s165_s1 = sadd.s32 1, %s1473_s16 }
  0x58   : > { %2260 = sst [smem:[#allocation47_spill]] %s2259_s12  ;;  %p175_p8 = scmp.ne.s32.totalorder %s1473_s16, %s1469_s15 }
  0x59   : > { %p176_p9 = scmp.eq.s32.totalorder %s1710_s9, 39  ;;  %p181_p11 = scmp.ne.s32.totalorder %s1469_s15, %s1465_s2 }
  0x5a   : > { %s1807_s27 = scalar_select %p131_p2, %s1485_s19, %s133_s21  }
  0x5b   : > { %p1809_p4 = por %p176_p9, %p175_p8  ;;  %s2264_s10 = sadd.s32 4294967294, %s1537_s8  }
  0x5c   : > { %2261 = sst [smem:[#allocation48_spill]] %s1807_s27  ;;  %p182_p13 = scmp.eq.s32.totalorder %s2264_s10, 39 }
  0x5d   : > { %s2262_s26 = scalar_select %p1809_p4, 1, 0 }
  0x5e   : > { %s161_s28 = ssub.s32 %s156_s24, %s157_s17  ;;  %p2228_p0 = scmp.lt.s32.totalorder %s1537_s8, 40 }
  0x5f   : > { %2263 = sst [smem:[#allocation49_spill]] %s2262_s26  ;;  %s162_s6 = sor.u32 %s161_s28, %s1754_s14 }
  0x60   : > { %p1819_p1 = por %p182_p13, %p181_p11  ;;  %p163_p2 = scmp.eq.s32.totalorder %s162_s6, 0 }
  0x61   : > { %s1824_s21 = sshll.u32 %s1529_s30, 2  ;;  %s921_s14 = sshll.u32 %s1533_s7, 4 }
  0x62   : > { %s2265_s11 = scalar_select %p1819_p1, 1, 0 }
  0x63   : > { %s984_s10 = scalar_select %p1735_p5, [#allocation7], [#allocation17] }
  0x64   : > { %2266 = sst [smem:[#allocation50_spill]] %s2265_s11  ;;  %s229_s6 = sand.u32 1, %s1497_s22  }
  0x65   : > { %s1829_s20 = scalar_select %p163_p2, %s1473_s16, %s165_s1  }
  0x66   : > { %s985_s24 = scalar_select %p1735_p5, %s1525_s29, 0 }
  0x67   : > { %2267 = sst [smem:[#allocation51_spill]] %s1829_s20  ;;  %s2337_s10 = smov (!%p2228_p0, %s984_s10), [#allocation21] }
  0x68   : > { %s2339_s24 = smov (!%p2228_p0, %s985_s24), 0  ;;  %s923_s27 = sshll.u32 %s229_s6, 3 }
  0x69   : > { %s207_s28 = sld [smem:[%s2337_s10 + %s2339_s24]]  ;;  %p1846_p8 = pnand %p2228_p0, %p1761_p10 }
  0x6a   : > { %p931_p9 = scmp.ge.s32.totalorder %s1537_s8, 1  ;;  %s231_s30 = scalar_lea.vmem [#allocation13], %s923_s27 }
  0x6b   : > { %s987_s17 = scalar_select %p1761_p10, [#allocation8], [#allocation18] }
  0x6c   : > { %s988_s10 = scalar_select %p1761_p10, %s1525_s29, 0 }
  0x6d   : > { %s243_s6 = sshll.u32 %s231_s30, 4  ;;  %p271_p11 = scmp.lt.s32.totalorder %s1537_s8, 41  ;;  %s1857_s6 = int_to_ptr.vmem [resolvable:$true] %s243_s6 }
  0x6e   : > { %s2341_s17 = smov (!%p2228_p0, %s987_s17), [#allocation22]  ;;  %s2343_s10 = smov (!%p2228_p0, %s988_s10), 0 }
  0x6f   : > { %s212_s24 = sadd.s32 %s1824_s21, %s207_s28  ;;  %s232_s23 = sld [smem:[%s2341_s17 + %s2343_s10]] }
  0x70   : > { %s214_s22 = sadd.s32 %s921_s14, %s212_s24  ;;  %p1873_p10 = pnand %p931_p9, %p271_p11 }
  0x71   : > { %s922_s20 = sshll.u32 %s214_s22, 7  ;;  %s2270_s27 = sshll.u32 %s1533_s7, 3 }
  0x72   : > { %s1862_s2 = scalar_lea.hbm %s2199_s3, %s922_s20  ;;  %s202_s10 = sand.u32 1, %s1509_s25  }
  0x73   : > { %s990_s30 = scalar_select %p1786_p3, [#allocation8], [#allocation19] }
  0x74   : > { %s2269_s22 = scalar_select %p1873_p10, 1, 0 }
  0x75   : > { %s991_s16 = scalar_select %p1786_p3, %s1525_s29, 0 }
  0x76   : > { %s2345_s30 = smov (!%p2228_p0, %s990_s30), [#allocation23]  ;;  %s237_s20 = sadd.s32 %s1824_s21, %s232_s23 }
  0x77   : > { %s2347_s16 = smov (!%p2228_p0, %s991_s16), 0  ;;  %s239_s14 = sadd.s32 %s2270_s27, %s237_s20 }
  0x78   : > { %s1884_s11 = sld [smem:[%s2345_s30 + %s2347_s16]]  ;;  %s926_s28 = sshll.u32 %s239_s14, 7 }
  0x79   : > { %s1892_s17 = scalar_lea.hbm %s2200_s4, %s926_s28  ;;  %s2271_s29 = sand.u32 1, %s1537_s8  }
  0x7a   : > { %s1897_s15 = scalar_lea.sflag [#allocation14], %s2271_s29  ;;  %s1251_s12 = scalar_lea.hbm %s1892_s17, 128 }
  0x7b   : > { %p1252_p13 = scmp.ne.s32.totalorder %s1892_s17, %s1251_s12  ;;  %p1253_p2 = pneg %p1846_p8 }
  0x7c   : > { %s1256_s23 = scalar_lea.hbm %s2200_s4, 2048  ;;  %p1257_p0 = scmp.lt.u32.totalorder %s1892_s17, %s2200_s4 }
  0x7d   : > { %p1254_p9 = pnand %p1253_p2, %p1252_p13  ;;  %p1258_p1 = scmp.lt.u32.totalorder %s1256_s23, %s1251_s12 }
  0x7e   : > { %p1260_p6 = scmp.lt.u32.totalorder %s1251_s12, %s1892_s17 }
  0x7f   : > { %p1255_p11 = pneg %p1254_p9  ;;  %p1259_p4 = por %p1258_p1, %p1257_p0 }
  0x81   : > { %p1261_p12 = por %p1260_p6, %p1259_p4 }
  0x83   : > { %p1262_p7 = pnand %p1261_p12, %p1255_p11 }
  0x85   : > { %1265 = shalt.err (!%p1262_p7)
}
  0x86   : > { %s1266_s29 = scalar_lea.vmem %s1857_s6, 128  ;;  %s1542_s27 = smov [#allocation13]  }
  0x87   : > { %p1267_p13 = scmp.ne.s32.totalorder %s1857_s6, %s1266_s29  ;;  %s1271_s14 = sshll.u32 %s1542_s27, 4  ;;  %s1272_s14 = int_to_ptr.vmem [resolvable:$false] %s1271_s14 }
  0x88   : > { %s1273_s28 = scalar_lea.vmem %s1272_s14, 256  ;;  %p1274_p3 = scmp.lt.s32.totalorder %s1857_s6, %s1272_s14 }
  0x89   : > { %p1269_p9 = pnand %p1267_p13, %p1253_p2  ;;  %p1275_p0 = scmp.lt.s32.totalorder %s1273_s28, %s1266_s29 }
  0x8b   : > { %p1270_p10 = pneg %p1269_p9  ;;  %p1276_p1 = por %p1275_p0, %p1274_p3 }
  0x8d   : > { %p1277_p6 = pnand %p1276_p1, %p1270_p10 }
  0x8f   : > { %1280 = shalt.err (!%p1277_p6)
}
  0x90   : > { %1010 = dma.hbm_to_vmem [thread:$0]  (!%p1846_p8), %s1892_s17, 128, %s1857_s6, %s1897_s15  }
  0x91   : > { %s260_s12 = sadd.s32 %s1824_s21, %s1884_s11  ;;  %s2272_s24 = sshll.u32 %s1533_s7, 3 }
  0x92   : > { %s1929_s30 = sadd.s32 %s2272_s24, %s260_s12  ;;  %s919_s1 = sshll.u32 %s202_s10, 4 }
  0x93   : > { %p2273_p7 = scmp.lt.s32.totalorder %s1537_s8, 40  ;;  %s206_s23 = scalar_lea.vmem [#allocation10], %s919_s1 }
  0x94   : > { %s217_s16 = sshll.u32 %s206_s23, 4  ;;  %s1945_s21 = scalar_lea.sflag [#allocation11], %s202_s10  ;;  %s1941_s16 = int_to_ptr.vmem [resolvable:$true] %s217_s16 }
  0x95   : > { %p1937_p12 = pnand %p2273_p7, %p1735_p5  ;;  %s1281_s6 = scalar_lea.hbm %s1862_s2, 256 }
  0x96   : > { %p1282_p3 = scmp.ne.s32.totalorder %s1862_s2, %s1281_s6  ;;  %s1286_s17 = scalar_lea.hbm %s2199_s3, 4096 }
  0x97   : > { %p1283_p4 = pneg %p1937_p12  ;;  %p1287_p10 = scmp.lt.u32.totalorder %s1862_s2, %s2199_s3 }
  0x98   : > { %p1288_p2 = scmp.lt.u32.totalorder %s1286_s17, %s1281_s6  ;;  %p1290_p13 = scmp.lt.u32.totalorder %s1281_s6, %s1862_s2 }
  0x99   : > { %p1284_p8 = pnand %p1283_p4, %p1282_p3 }
  0x9a   : > { %p1289_p11 = por %p1288_p2, %p1287_p10 }
  0x9b   : > { %p1285_p5 = pneg %p1284_p8 }
  0x9c   : > { %p1291_p9 = por %p1290_p13, %p1289_p11 }
  0x9e   : > { %p1292_p0 = pnand %p1291_p9, %p1285_p5 }
  0xa0   : > { %1295 = shalt.err (!%p1292_p0)
}
  0xa1   : > { %s1296_s10 = scalar_lea.vmem %s1941_s16, 256  ;;  %s1543_s27 = smov [#allocation10]  }
  0xa2   : > { %p1297_p1 = scmp.ne.s32.totalorder %s1941_s16, %s1296_s10  ;;  %s1301_s14 = sshll.u32 %s1543_s27, 4  ;;  %s1302_s14 = int_to_ptr.vmem [resolvable:$false] %s1301_s14 }
  0xa3   : > { %s1303_s28 = scalar_lea.vmem %s1302_s14, 512  ;;  %p1304_p3 = scmp.lt.s32.totalorder %s1941_s16, %s1302_s14 }
  0xa4   : > { %p1299_p6 = pnand %p1297_p1, %p1283_p4  ;;  %p1305_p8 = scmp.lt.s32.totalorder %s1303_s28, %s1296_s10 }
  0xa6   : > { %p1300_p7 = pneg %p1299_p6  ;;  %p1306_p10 = por %p1305_p8, %p1304_p3 }
  0xa8   : > { %p1307_p2 = pnand %p1306_p10, %p1300_p7 }
  0xaa   : > { %1310 = shalt.err (!%p1307_p2)
}
  0xab   : > { %s1544_s12 = smov 1024   ;;  %s1545_s24 = smov 128  }
  0xac   : > { %s1546_s1 = smov 8   ;;  %s252_s23 = sand.u32 1, %s1485_s19  }
  0xad   : > { %1005 = dma.hbm_to_vmem [thread:$0]  (!%p1937_p12), %s1862_s2, 256, %s1941_s16, %s1945_s21, %s1544_s12, %s1545_s24, %s1546_s1  }
  0xae   : > { %s930_s6 = sshll.u32 %s1929_s30, 7  ;;  %s927_s0 = sshll.u32 %s252_s23, 3 }
  0xaf   : > { %s1978_s20 = scalar_lea.hbm %s2201_s5, %s930_s6  ;;  %p2275_p4 = scmp.ne.s32.totalorder %s2257_s13, 0 }
  0xb0   : > { %p2276_p5 = scmp.lt.s32.totalorder %s1537_s8, 40  ;;  %s254_s2 = scalar_lea.vmem [#allocation15], %s927_s0 }
  0xb1   : > { %s266_s30 = sshll.u32 %s254_s2, 4  ;;  %s1311_s26 = scalar_lea.hbm %s1978_s20, 128  ;;  %s267_s30 = int_to_ptr.vmem [resolvable:$true] %s266_s30 }
  0xb2   : > { %p1984_p11 = pnand %p2276_p5, %p2275_p4  ;;  %p1312_p12 = scmp.ne.s32.totalorder %s1978_s20, %s1311_s26 }
  0xb3   : > { %s1316_s21 = scalar_lea.hbm %s2201_s5, 2048  ;;  %p1317_p1 = scmp.lt.u32.totalorder %s1978_s20, %s2201_s5 }
  0xb4   : > { %p1313_p13 = pneg %p1984_p11  ;;  %p1318_p6 = scmp.lt.u32.totalorder %s1316_s21, %s1311_s26 }
  0xb5   : > { %p1320_p3 = scmp.lt.u32.totalorder %s1311_s26, %s1978_s20 }
  0xb6   : > { %p1314_p9 = pnand %p1313_p13, %p1312_p12  ;;  %p1319_p7 = por %p1318_p6, %p1317_p1 }
  0xb8   : > { %p1315_p0 = pneg %p1314_p9  ;;  %p1321_p8 = por %p1320_p3, %p1319_p7 }
  0xba   : > { %p1322_p10 = pnand %p1321_p8, %p1315_p0 }
  0xbc   : > { %1325 = shalt.err (!%p1322_p10)
}
  0xbd   : > { %s1326_s14 = scalar_lea.vmem %s267_s30, 128  ;;  %s1547_s28 = smov [#allocation15]  }
  0xbe   : > { %p1327_p2 = scmp.ne.s32.totalorder %s267_s30, %s1326_s14  ;;  %s1331_s12 = sshll.u32 %s1547_s28, 4  ;;  %s1332_s12 = int_to_ptr.vmem [resolvable:$false] %s1331_s12 }
  0xbf   : > { %s1333_s24 = scalar_lea.vmem %s1332_s12, 256  ;;  %p1334_p12 = scmp.lt.s32.totalorder %s267_s30, %s1332_s12 }
  0xc0   : > { %p1329_p4 = pnand %p1327_p2, %p1313_p13  ;;  %p1335_p9 = scmp.lt.s32.totalorder %s1333_s24, %s1326_s14 }
  0xc2   : > { %p1330_p5 = pneg %p1329_p4  ;;  %p1336_p1 = por %p1335_p9, %p1334_p12 }
  0xc4   : > { %p1337_p6 = pnand %p1336_p1, %p1330_p5 }
  0xc6   : > { %1340 = shalt.err (!%p1337_p6)
}
  0xc7   : > { %1015 = dma.hbm_to_vmem [thread:$0]  (!%p1984_p11), %s1978_s20, 128, %s267_s30, %s1897_s15  }
  0xc8   : > { %p2278_p0 = scmp.ne.s32.totalorder %s2269_s22, 0 }
  0xc9   : > { %s2279_s1 = sld [smem:[#allocation34_spill]] (!%p2278_p0)  ;;  %s2280_s23 = sld [smem:[#allocation42_spill]] (!%p2278_p0) }
  0xca   : > { %275 = sbr.rel (%p2278_p0) target bundleno = 1920 (0x780), region = 32 }
  0xcf   : > { %s277_s6 = sand.u32 (!%p2278_p0), 1, %s2279_s1   ;;  %p2281_p13 = scmp.ne.s32.totalorder (!%p2278_p0), %s2280_s23, 0 }
  0xd0   : > { %s932_s0 = sshll.u32 (!%p2278_p0), %s277_s6, 4  ;;  %s278_s11 = scalar_lea.sflag (!%p2278_p0), [#allocation11], %s277_s6 }
  0xd1   : > { %s281_s17 = scalar_lea.vmem [#allocation10], %s932_s0 }
  0xd2   : > { %1448 = dma.done.wait (%p2281_p13), %s278_s11, 256  }
  0xd3   : > { %1450 = vsyncadd (%p2281_p13), %s278_s11, 4294967040  ;;  %s2282_s2 = sld [smem:[#allocation32_spill]]  ;;  %s2283_s29 = sld [smem:[#allocation44_spill]] }
  0xd4   : > { %s286_s26 = sand.u32 1, %s1710_s9  }
  0xd5   : > { %s287_s22 = scalar_lea.sflag [#allocation14], %s286_s26 }
  0xd9   : > { %s288_s13 = sand.u32 1, %s2282_s2   ;;  %p2284_p11 = scmp.ne.s32.totalorder %s2283_s29, 0 }
  0xda   : > { %s2019_s15 = sshll.u32 %s288_s13, 3 }
  0xdb   : > { %s290_s20 = scalar_lea.vmem [#allocation13], %s2019_s15 }
  0xdc   : > { %1452 = dma.done.wait (%p2284_p11), %s287_s22, 128  }
  0xdd   : > { %1454 = vsyncadd (%p2284_p11), %s287_s22, 4294967168  ;;  %s2285_s30 = sld [smem:[#allocation47_spill]]  ;;  %s297_s16 = sand.u32 1, %s1481_s18  }
  0xde   : > { %s2027_s21 = sshll.u32 %s297_s16, 3 }
  0xdf   : > { %s299_s10 = scalar_lea.vmem [#allocation15], %s2027_s21 }
  0xe3   : > { %p2286_p7 = scmp.ne.s32.totalorder %s2285_s30, 0 }
  0xe5   : > { %1456 = dma.done.wait (%p2286_p7), %s287_s22, 128  }
  0xe6   : > { %1458 = vsyncadd (%p2286_p7), %s287_s22, 4294967168  ;;  %s2287_s9 = sld [smem:[#allocation30_spill]]  ;;  %s2288_s27 = sld [smem:[#allocation35_spill]] }
  0xec   : > { %s329_s14 = sand.u32 1, %s2287_s9   ;;  %s337_s28 = sld [smem:[#allocation7 + %s2288_s27]] }
  0xed   : > { %s338_s12 = sld [smem:[#allocation8 + %s2288_s27]]  ;;  %s935_s24 = sshll.u32 %s329_s14, 4 }
  0xee   : > { %s2039_s1 = scalar_lea.vmem [#allocation16], %s935_s24 }
  0xf3   : > { %p936_p3 = scmp.ne.s32.totalorder %s338_s12, 0 }
  0xf4   : > { %v343_v0 = vld [vmem:[%s281_s17] sm:$0xff] (!%p936_p3)  ;;  %v344_v1 = vld [vmem:[%s281_s17 + $0x8] sm:$0xff] (!%p936_p3)  ;;  %vm348_vm0 = vcmask (!%p936_p3), 261120   ;;  %vm350_vm1 = vcmask (!%p936_p3), 7168   ;;  %v1548_v4 = vmov (!%p936_p3), -inf   ;;  %v1549_v5 = vmov (!%p936_p3), 0.0  }
  0xf5   : > { %342 = sbr.rel (%p936_p3) target bundleno = 252 (0xfc), region = 48  ;;  %v345_v2 = vmul.f32 (!%p936_p3), 0.17677669, %v343_v0  ;;  %v346_v3 = vmul.f32 (!%p936_p3), 0.17677669, %v344_v1  ;;  %351 = vst.msk [vmem:[#allocation3] sm:$0xff] (!%p936_p3), %vm350_vm1, %v1548_v4 }
  0xf6   : > { %352 = vst.msk [vmem:[#allocation3 + $0x8] sm:$0xff] (!%p936_p3), %vm350_vm1, %v1548_v4  ;;  %353 = vst.msk [vmem:[#allocation4] sm:$0xff] (!%p936_p3), %vm350_vm1, %v1549_v5 }
  0xf7   : > { %354 = vst.msk [vmem:[#allocation4 + $0x8] sm:$0xff] (!%p936_p3), %vm350_vm1, %v1549_v5  ;;  %v347_v6 = vpack.c.bf16 (!%p936_p3), %v346_v3, %v345_v2 }
  0xf8   : > { %355 = vst.msk [vmem:[#allocation5] sm:$0xff] (!%p936_p3), %vm348_vm0, %v1549_v5  ;;  %356 = vst.msk [vmem:[#allocation5 + $0x8] sm:$0xff] (!%p936_p3), %vm348_vm0, %v1549_v5 }
  0xf9   : > { %349 = vst.msk [vmem:[#allocation2] sm:$0xff] (!%p936_p3), %vm348_vm0, %v347_v6 }
  0xfc PF: > { %s937_s23 = sshll.u32 %s338_s12, 3  ;;  %s2041_s6 = sshll.u32 %s337_s28, 3 }
  0xfd   : > { %s2043_s0 = sadd.s32 7, %s937_s23  ;;  %s2046_s11 = ssub.s32 %s2041_s6, %s937_s23 }
  0xfe   : > { %p939_p8 = scmp.gt.s32.totalorder %s2043_s0, %s2041_s6 }
  0xff   : > { %v366_v7 = vld [vmem:[%s290_s20] sm:$0xff] (!%p939_p8)  ;;  %vm370_vm2 = vcmask (!%p939_p8), 261120   ;;  %v1550_v8 = vmov (!%p939_p8), 0.0   ;;  %vm1551_vm3 = vmmov (!%p939_p8), 0   ;;  %vm420_vm4 = vcmask (!%p939_p8), 64512   ;;  %v418_v19 = vld [vmem:[#allocation3] sm:$0xff] (!%p939_p8) }
 0x100   : > { %365 = sbr.rel (%p939_p8) target bundleno = 989 (0x3dd), region = 52  ;;  %960 = vmatprep.subr.bf16.mxu0 (!%p939_p8), %v1550_v8  ;;  %v369_v9 = vpack.c.bf16 (!%p939_p8), %v366_v7, %v366_v7  ;;  %962 = vmatprep.mubr.msk.bf16.mxu0 (!%p939_p8), %vm1551_vm3, %v1550_v8  ;;  %v368_v11 = vld [vmem:[#allocation2] sm:$0xff] (!%p939_p8)  ;;  %v1552_v18 = vmov (!%p939_p8), 0   ;;  %vm463_vm5 = vcmask (!%p939_p8), 7168   ;;  %v419_v22 = vld [vmem:[#allocation3 + $0x8] sm:$0xff] (!%p939_p8)  ;;  %vm471_vm6 = vcmask (!%p939_p8), 1043456  }
 0x101   : > { %966 = vmatprep.subr.bf16.mxu1 (!%p939_p8), %v1550_v8  ;;  %968 = vmatprep.mubr.msk.bf16.mxu1 (!%p939_p8), %vm1551_vm3, %v1550_v8  ;;  %v367_v27 = vld [vmem:[%s299_s10] sm:$0xff] (!%p939_p8)  ;;  %v451_v45 = vld [vmem:[#allocation4] sm:$0xff] (!%p939_p8)  ;;  %v452_v48 = vld [vmem:[#allocation4 + $0x8] sm:$0xff] (!%p939_p8) }
 0x102   : > { %v375_v10 = vsel (!%p939_p8), %vm370_vm2, %v369_v9, 0  ;;  %1192 = vset.pattern.permute.xlu1 (!%p939_p8), %v1552_v18  ;;  %1193 = vset.pattern.permute.xlu0 (!%p939_p8), %v1552_v18  ;;  %v467_v28 = vpack.c.bf16 (!%p939_p8), %v367_v27, %v367_v27  ;;  %v516_v53 = vld [vmem:[#allocation5] sm:$0xff] (!%p939_p8)  ;;  %v517_v55 = vld [vmem:[#allocation5 + $0x8] sm:$0xff] (!%p939_p8) }
 0x103   : > { %961 = vmatpush3.bf16.xpose.msra.mxu0 (!%p939_p8), %v375_v10 }
 0x104   : > { %v473_v29 = vsel (!%p939_p8), %vm471_vm6, %v467_v28, 0 }
 0x105   : > { %967 = vmatpush3.bf16.msra.mxu1 (!%p939_p8), %v473_v29 }
 0x10a   : > { %963 = vmatmul.mubr.msk.bf16.vlgmr.msra.gmra.mrb[0].mxu0 %vm370_vm2, %v368_v11 }
 0x1dd   : > { %v411_v12 = vpop.f32.mrb[0].mxu0 }
 0x1de   : > { %v964_v13 = vpop.f32.mrb[1].mxu0  ;;  %v421_v14 = vsel %vm420_vm4, %v411_v12, -inf }
 0x1df   : > { %422 = vmax.xlane.f32.xlu0 %v421_v14  ;;  %v414_v15 = vpop.f32.mrb[2].mxu0 }
 0x1e0   : > { %v965_v16 = vpop.f32.mrb[3].mxu0  ;;  %v424_v17 = vsel %vm420_vm4, %v414_v15, -inf }
 0x1e3   : > { %425 = vmax.xlane.f32.xlu0 %v424_v17 }
 0x26c   : > { %v423_v20 = vpop.xlane.xlu0 %422 }
 0x26d   : > { %v427_v21 = vmax.f32 %v418_v19, %v423_v20 }
 0x26f   : > { %v429_v23 = vsub.f32 %v418_v19, %v427_v21  ;;  %534 = vst.msk [vmem:[#allocation3] sm:$0xff] %vm463_vm5, %v427_v21  ;;  %437 = vperm.xlu1 %1192, %v427_v21  }
 0x270   : > { %v426_v24 = vpop.xlane.xlu0 %425 }
 0x271   : > { %v428_v25 = vmax.f32 %v419_v22, %v426_v24  ;;  %v431_v42 = vmul.f32 1.442695, %v429_v23 }
 0x273   : > { %v430_v26 = vsub.f32 %v419_v22, %v428_v25  ;;  %535 = vst.msk [vmem:[#allocation3 + $0x8] sm:$0xff] %vm463_vm5, %v428_v25  ;;  %442 = vperm.xlu1 %1192, %v428_v25  }
 0x275   : > { %v433_v41 = vmul.f32 1.442695, %v430_v26 }
 0x2ee   : > { %v438_v30 = vpop.permute.xlu1 %437 }
 0x2ef   : > { %v445_v31 = vsub.f32 %v411_v12, %v438_v30 }
 0x2f1   : > { %v447_v32 = vmul.f32 1.442695, %v445_v31 }
 0x2f2   : > { %v443_v33 = vpop.permute.xlu1 %442 }
 0x2f3   : > { %1194 = vpow2.f32 %v447_v32  ;;  %v446_v34 = vsub.f32 %v414_v15, %v443_v33 }
 0x2f5   : > { %v449_v35 = vmul.f32 1.442695, %v446_v34 }
 0x2f7   : > { %1196 = vpow2.f32 %v449_v35 }
 0x2f8   : > { %1198 = vpow2.f32 %v433_v41 }
 0x2f9   : > { %1200 = vpow2.f32 %v431_v42 }
 0x2fd   : > { %v1195_v36 = vpop.eup %1194 }
 0x2fe   : > { %v455_v37 = vsel %vm420_vm4, %v1195_v36, 0.0 }
 0x2ff   : > { %456 = vadd.xlane.f32.xlu0 %v455_v37 }
 0x301   : > { %v1197_v38 = vpop.eup %1196 }
 0x302   : > { %v458_v39 = vsel %vm420_vm4, %v1197_v38, 0.0  ;;  %v466_v40 = vpack.c.bf16 %v1197_v38, %v1195_v36  ;;  %v1199_v43 = vpop.eup %1198 }
 0x303   : > { %459 = vadd.xlane.f32.xlu1 %v458_v39  ;;  %v1201_v44 = vpop.eup %1200  ;;  %v454_v50 = vmul.f32 %v1199_v43, %v452_v48 }
 0x304   : > { %969 = vmatmul.mubr.msk.bf16.vlgmr.msra.gmra.mrb[0].mxu1 %vm420_vm4, %v466_v40  ;;  %v453_v46 = vmul.f32 %v1201_v44, %v451_v45 }
 0x314   : > { %525 = vperm.xlu1 %1192, %v1199_v43  }
 0x315   : > { %520 = vperm.xlu0 %1193, %v1201_v44  }
 0x38c   : > { %v457_v47 = vpop.xlane.xlu0 %456 }
 0x38d   : > { %v461_v49 = vadd.f32 %v457_v47, %v453_v46 }
 0x38f   : > { %464 = vst.msk [vmem:[#allocation4] sm:$0xff] %vm463_vm5, %v461_v49 }
 0x390   : > { %v460_v51 = vpop.xlane.xlu1 %459 }
 0x391   : > { %v462_v52 = vadd.f32 %v460_v51, %v454_v50 }
 0x393   : > { %465 = vst.msk [vmem:[#allocation4 + $0x8] sm:$0xff] %vm463_vm5, %v462_v52 }
 0x394   : > { %v521_v54 = vpop.permute.xlu0 %520  ;;  %v526_v56 = vpop.permute.xlu1 %525 }
 0x395   : > { %v528_v57 = vmul.f32 %v521_v54, %v516_v53  ;;  %v529_v59 = vmul.f32 %v526_v56, %v517_v55 }
 0x3d7   : > { %v509_v58 = vpop.f32.mrb[0].mxu1 }
 0x3d8   : > { %v530_v60 = vadd.f32 %v528_v57, %v509_v58  ;;  %v970_v61 = vpop.f32.mrb[1].mxu1 }
 0x3d9   : > { %v512_v62 = vpop.f32.mrb[2].mxu1 }
 0x3da   : > { %532 = vst.msk [vmem:[#allocation5] sm:$0xff] %vm370_vm2, %v530_v60  ;;  %v531_v63 = vadd.f32 %v529_v59, %v512_v62  ;;  %v971_v0 = vpop.f32.mrb[3].mxu1 }
 0x3dc   : > { %533 = vst.msk [vmem:[#allocation5 + $0x8] sm:$0xff] %vm370_vm2, %v531_v63 }
 0x3dd PF: > { %p942_p10 = scmp.le.s32.totalorder %s2043_s0, %s2041_s6 }
 0x3de   : > { %v539_v1 = vld [vmem:[%s290_s20] sm:$0xff] (!%p942_p10)  ;;  %vm543_vm7 = vcmask (!%p942_p10), 261120   ;;  %v1553_v2 = vmov (!%p942_p10), 0.0   ;;  %vm1554_vm8 = vmmov (!%p942_p10), 0   ;;  %v591_v6 = vlaneseq (!%p942_p10)  ;;  %v602_v20 = vld [vmem:[#allocation3] sm:$0xff] (!%p942_p10)  ;;  %v603_v23 = vld [vmem:[#allocation3 + $0x8] sm:$0xff] (!%p942_p10) }
 0x3df   : > { %538 = sbr.rel (%p942_p10) target bundleno = 1725 (0x6bd), region = 56  ;;  %972 = vmatprep.subr.bf16.mxu0 (!%p942_p10), %v1553_v2  ;;  %v542_v3 = vpack.c.bf16 (!%p942_p10), %v539_v1, %v539_v1  ;;  %974 = vmatprep.mubr.msk.bf16.mxu0 (!%p942_p10), %vm1554_vm8, %v1553_v2  ;;  %v541_v5 = vld [vmem:[#allocation2] sm:$0xff] (!%p942_p10)  ;;  %v596_v10 = vstv (!%p942_p10), %s2046_s11  ;;  %vm604_vm10 = vcmask (!%p942_p10), 64512   ;;  %v1555_v19 = vmov (!%p942_p10), 0   ;;  %v540_v28 = vld [vmem:[%s299_s10] sm:$0xff] (!%p942_p10)  ;;  %v635_v46 = vld [vmem:[#allocation4] sm:$0xff] (!%p942_p10) }
 0x3e0   : > { %978 = vmatprep.subr.bf16.mxu1 (!%p942_p10), %v1553_v2  ;;  %980 = vmatprep.mubr.msk.bf16.mxu1 (!%p942_p10), %vm1554_vm8, %v1553_v2  ;;  %v592_v7 = vand.u32 (!%p942_p10), 127, %v591_v6  ;;  %v594_v8 = vshrl.u32 (!%p942_p10), %v591_v6, 7  ;;  %vm647_vm11 = vcmask (!%p942_p10), 7168   ;;  %v651_v29 = vpack.c.bf16 (!%p942_p10), %v540_v28, %v540_v28  ;;  %v636_v49 = vld [vmem:[#allocation4 + $0x8] sm:$0xff] (!%p942_p10) }
 0x3e1   : > { %v548_v4 = vsel (!%p942_p10), %vm543_vm7, %v542_v3, 0  ;;  %1202 = vset.pattern.permute.xlu1 (!%p942_p10), %v1555_v19  ;;  %1203 = vset.pattern.permute.xlu0 (!%p942_p10), %v1555_v19  ;;  %vm655_vm12 = vcmask (!%p942_p10), 1043456   ;;  %v700_v54 = vld [vmem:[#allocation5] sm:$0xff] (!%p942_p10) }
 0x3e2   : > { %973 = vmatpush3.bf16.xpose.msra.mxu0 (!%p942_p10), %v548_v4  ;;  %v595_v9 = vsub.s32 (!%p942_p10), %v592_v7, %v594_v8  ;;  %v657_v30 = vsel (!%p942_p10), %vm655_vm12, %v651_v29, 0 }
 0x3e3   : > { %979 = vmatpush3.bf16.msra.mxu1 (!%p942_p10), %v657_v30  ;;  %v701_v56 = vld [vmem:[#allocation5 + $0x8] sm:$0xff] (!%p942_p10) }
 0x3e4   : > { %vm597_vm9 = vcmp.gt.s32.totalorder (!%p942_p10), %v595_v9, %v596_v10 }
 0x3e9   : > { %975 = vmatmul.mubr.msk.bf16.vlgmr.msra.gmra.mrb[0].mxu0 %vm543_vm7, %v541_v5 }
 0x4bc   : > { %v584_v11 = vpop.f32.mrb[0].mxu0 }
 0x4bd   : > { %v600_v12 = vsel %vm597_vm9, -3.4028235e+38, %v584_v11  ;;  %v976_v13 = vpop.f32.mrb[1].mxu0 }
 0x4be   : > { %v587_v14 = vpop.f32.mrb[2].mxu0  ;;  %v605_v15 = vsel %vm604_vm10, %v600_v12, -inf }
 0x4bf   : > { %v601_v16 = vsel %vm597_vm9, -3.4028235e+38, %v587_v14  ;;  %606 = vmax.xlane.f32.xlu0 %v605_v15  ;;  %v977_v17 = vpop.f32.mrb[3].mxu0 }
 0x4c0   : > { %v608_v18 = vsel %vm604_vm10, %v601_v16, -inf }
 0x4c3   : > { %609 = vmax.xlane.f32.xlu0 %v608_v18 }
 0x54c   : > { %v607_v21 = vpop.xlane.xlu0 %606 }
 0x54d   : > { %v611_v22 = vmax.f32 %v602_v20, %v607_v21 }
 0x54f   : > { %v613_v24 = vsub.f32 %v602_v20, %v611_v22  ;;  %718 = vst.msk [vmem:[#allocation3] sm:$0xff] %vm647_vm11, %v611_v22  ;;  %621 = vperm.xlu1 %1202, %v611_v22  }
 0x550   : > { %v610_v25 = vpop.xlane.xlu0 %609 }
 0x551   : > { %v612_v26 = vmax.f32 %v603_v23, %v610_v25  ;;  %v615_v43 = vmul.f32 1.442695, %v613_v24 }
 0x553   : > { %v614_v27 = vsub.f32 %v603_v23, %v612_v26  ;;  %719 = vst.msk [vmem:[#allocation3 + $0x8] sm:$0xff] %vm647_vm11, %v612_v26  ;;  %626 = vperm.xlu1 %1202, %v612_v26  }
 0x555   : > { %v617_v42 = vmul.f32 1.442695, %v614_v27 }
 0x5ce   : > { %v622_v31 = vpop.permute.xlu1 %621 }
 0x5cf   : > { %v629_v32 = vsub.f32 %v600_v12, %v622_v31 }
 0x5d1   : > { %v631_v33 = vmul.f32 1.442695, %v629_v32 }
 0x5d2   : > { %v627_v34 = vpop.permute.xlu1 %626 }
 0x5d3   : > { %1204 = vpow2.f32 %v631_v33  ;;  %v630_v35 = vsub.f32 %v601_v16, %v627_v34 }
 0x5d5   : > { %v633_v36 = vmul.f32 1.442695, %v630_v35 }
 0x5d7   : > { %1206 = vpow2.f32 %v633_v36 }
 0x5d8   : > { %1208 = vpow2.f32 %v617_v42 }
 0x5d9   : > { %1210 = vpow2.f32 %v615_v43 }
 0x5dd   : > { %v1205_v37 = vpop.eup %1204 }
 0x5de   : > { %v639_v38 = vsel %vm604_vm10, %v1205_v37, 0.0 }
 0x5df   : > { %640 = vadd.xlane.f32.xlu0 %v639_v38 }
 0x5e1   : > { %v1207_v39 = vpop.eup %1206 }
 0x5e2   : > { %v642_v40 = vsel %vm604_vm10, %v1207_v39, 0.0  ;;  %v650_v41 = vpack.c.bf16 %v1207_v39, %v1205_v37  ;;  %v1209_v44 = vpop.eup %1208 }
 0x5e3   : > { %643 = vadd.xlane.f32.xlu1 %v642_v40  ;;  %v1211_v45 = vpop.eup %1210  ;;  %v638_v51 = vmul.f32 %v1209_v44, %v636_v49 }
 0x5e4   : > { %981 = vmatmul.mubr.msk.bf16.vlgmr.msra.gmra.mrb[0].mxu1 %vm604_vm10, %v650_v41  ;;  %v637_v47 = vmul.f32 %v1211_v45, %v635_v46 }
 0x5f4   : > { %709 = vperm.xlu1 %1202, %v1209_v44  }
 0x5f5   : > { %704 = vperm.xlu0 %1203, %v1211_v45  }
 0x66c   : > { %v641_v48 = vpop.xlane.xlu0 %640 }
 0x66d   : > { %v645_v50 = vadd.f32 %v641_v48, %v637_v47 }
 0x66f   : > { %648 = vst.msk [vmem:[#allocation4] sm:$0xff] %vm647_vm11, %v645_v50 }
 0x670   : > { %v644_v52 = vpop.xlane.xlu1 %643 }
 0x671   : > { %v646_v53 = vadd.f32 %v644_v52, %v638_v51 }
 0x673   : > { %649 = vst.msk [vmem:[#allocation4 + $0x8] sm:$0xff] %vm647_vm11, %v646_v53 }
 0x674   : > { %v705_v55 = vpop.permute.xlu0 %704  ;;  %v710_v57 = vpop.permute.xlu1 %709 }
 0x675   : > { %v712_v58 = vmul.f32 %v705_v55, %v700_v54  ;;  %v713_v60 = vmul.f32 %v710_v57, %v701_v56 }
 0x6b7   : > { %v693_v59 = vpop.f32.mrb[0].mxu1 }
 0x6b8   : > { %v714_v61 = vadd.f32 %v712_v58, %v693_v59  ;;  %v982_v62 = vpop.f32.mrb[1].mxu1 }
 0x6b9   : > { %v696_v63 = vpop.f32.mrb[2].mxu1 }
 0x6ba   : > { %716 = vst.msk [vmem:[#allocation5] sm:$0xff] %vm543_vm7, %v714_v61  ;;  %v715_v0 = vadd.f32 %v713_v60, %v696_v63  ;;  %v983_v1 = vpop.f32.mrb[3].mxu1 }
 0x6bc   : > { %717 = vst.msk [vmem:[#allocation5 + $0x8] sm:$0xff] %vm543_vm7, %v715_v0 }
 0x6bd PF: > { %s2289_s17 = sld [smem:[#allocation35_spill]] }
 0x6c3   : > { %s720_s2 = sld [smem:[#allocation9 + %s2289_s17]] }
 0x6c9   : > { %p945_p2 = scmp.ne.s32.totalorder %s720_s2, 1 }
 0x6ca   : > { %v725_v2 = vld [vmem:[#allocation4] sm:$0xff] (!%p945_p2)  ;;  %v726_v3 = vld [vmem:[#allocation4 + $0x8] sm:$0xff] (!%p945_p2)  ;;  %v1556_v4 = vmov (!%p945_p2), 0   ;;  %v731_v7 = vld [vmem:[#allocation5] sm:$0xff] (!%p945_p2)  ;;  %vm745_vm13 = vcmask (!%p945_p2), 261120  }
 0x6cb   : > { %724 = sbr.rel (%p945_p2) target bundleno = 1885 (0x75d), region = 60  ;;  %1212 = vset.pattern.permute.xlu0 (!%p945_p2), %v1556_v4  ;;  %1213 = vrcp.f32 (!%p945_p2), %v725_v2  ;;  %v732_v10 = vld [vmem:[#allocation5 + $0x8] sm:$0xff] (!%p945_p2) }
 0x6cc   : > { %1215 = vrcp.f32 (!%p945_p2), %v726_v3 }
 0x6d5   : > { %v1214_v5 = vpop.eup %1213 }
 0x6d6   : > { %735 = vperm.xlu0 %1212, %v1214_v5   ;;  %v1216_v6 = vpop.eup %1215 }
 0x6da   : > { %740 = vperm.xlu0 %1212, %v1216_v6  }
 0x755   : > { %v736_v8 = vpop.permute.xlu0 %735 }
 0x756   : > { %v743_v9 = vmul.f32 %v736_v8, %v731_v7 }
 0x758   : > { %746 = vst.msk [vmem:[%s2039_s1] sm:$0xff] %vm745_vm13, %v743_v9 }
 0x759   : > { %v741_v11 = vpop.permute.xlu0 %740 }
 0x75a   : > { %v744_v12 = vmul.f32 %v741_v11, %v732_v10 }
 0x75c   : > { %747 = vst.msk [vmem:[%s2039_s1 + $0x8] sm:$0xff] %vm745_vm13, %v744_v12 }
 0x75d PF: > { %s2290_s29 = sld [smem:[#allocation49_spill]]  ;;  %s2292_s26 = sld [smem:[#allocation35_spill]] }
 0x75e   : > { %s2293_s13 = sld [smem:[#allocation36_spill]]  ;;  %s2294_s15 = sld [smem:[#allocation37_spill]] }
 0x75f   : > { %s766_s16 = sshll.u32 %s2039_s1, 4  ;;  %s2296_s23 = sld [smem:[#allocation52_spill]]  ;;  %s2098_s16 = int_to_ptr.vmem [resolvable:$true] %s766_s16 }
 0x760   : > { %s2107_s11 = scalar_lea.sflag [#allocation12], %s329_s14  ;;  %s1341_s17 = scalar_lea.vmem %s2098_s16, 256 }
 0x761   : > { %p1342_p5 = scmp.ne.s32.totalorder %s2098_s16, %s1341_s17  ;;  %s1557_s1 = smov [#allocation16]  }
 0x762   : > { %s1345_s2 = sshll.u32 %s1557_s1, 4  ;;  %s1346_s2 = int_to_ptr.vmem [resolvable:$false] %s1345_s2 }
 0x763   : > { %p2291_p4 = scmp.ne.s32.totalorder %s2290_s29, 0  ;;  %p1348_p1 = scmp.lt.s32.totalorder %s2098_s16, %s1346_s2 }
 0x764   : > { %s947_s21 = sshll.u32 %s2293_s13, 2  ;;  %s948_s10 = sshll.u32 %s2294_s15, 4 }
 0x765   : > { %s996_s20 = scalar_select %p2291_p4, [#allocation7], [#allocation20] }
 0x766   : > { %s2349_s26 = smov (!%p2291_p4, %s2292_s26), 0  ;;  %s2297_s6 = smov %s2296_s23 }
 0x767   : > { %s756_s30 = sld [smem:[%s996_s20 + %s2349_s26]]  ;;  %p1343_p12 = pnand %p1342_p5, %p2291_p4 }
 0x768   : > { %s1347_s26 = scalar_lea.vmem %s1346_s2, 512 }
 0x769   : > { %p1344_p9 = pneg %p1343_p12  ;;  %p1349_p6 = scmp.lt.s32.totalorder %s1347_s26, %s1341_s17 }
 0x76b   : > { %p1350_p0 = por %p1349_p6, %p1348_p1 }
 0x76d   : > { %s761_s9 = sadd.s32 %s947_s21, %s756_s30  ;;  %p1351_p13 = pnand %p1350_p0, %p1344_p9 }
 0x76e   : > { %s763_s27 = sadd.s32 %s948_s10, %s761_s9 }
 0x76f   : > { %s949_s28 = sshll.u32 %s763_s27, 7 }
 0x770   : > { %s2103_s0 = scalar_lea.hbm %s2296_s23, %s949_s28 }
 0x771   : > { %1354 = shalt.err (!%p1351_p13)
}
 0x772   : > { %s1355_s14 = scalar_lea.hbm %s2103_s0, 256  ;;  %s1359_s22 = scalar_lea.hbm %s2297_s6, 4096 }
 0x773   : > { %p1356_p11 = scmp.ne.s32.totalorder %s2103_s0, %s1355_s14  ;;  %p1360_p8 = scmp.lt.u32.totalorder %s2103_s0, %s2297_s6 }
 0x774   : > { %p1361_p10 = scmp.lt.u32.totalorder %s1359_s22, %s1355_s14  ;;  %p1363_p5 = scmp.lt.u32.totalorder %s1355_s14, %s2103_s0 }
 0x775   : > { %p1357_p7 = pnand %p1356_p11, %p2291_p4 }
 0x776   : > { %p1362_p2 = por %p1361_p10, %p1360_p8 }
 0x777   : > { %p1358_p3 = pneg %p1357_p7 }
 0x778   : > { %p1364_p12 = por %p1363_p5, %p1362_p2 }
 0x77a   : > { %p1365_p9 = pnand %p1364_p12, %p1358_p3 }
 0x77c   : > { %1368 = shalt.err (!%p1365_p9)
}
 0x77d   : > { %s1558_s21 = smov 128   ;;  %s1559_s10 = smov 1024  }
 0x77e   : > { %s1560_s9 = smov 8  }
 0x77f   : > { %998 = dma.vmem_to_hbm [thread:$0]  (%p2291_p4), %s2098_s16, 256, %s2103_s0, %s2107_s11, %s1558_s21, %s1559_s10, %s1560_s9  }
 0x780 PF: > { %s2298_s27 = sld [smem:[#allocation29_spill]]  ;;  %p1021_p1 = scmp.ge.s32.totalorder %s1537_s8, 2 }
 0x781   : > { %s2299_s28 = sld [smem:[#allocation50_spill]] }
 0x786   : > { %s781_s12 = sand.u32 1, %s2298_s27  }
 0x787   : > { %p2300_p6 = scmp.ne.s32.totalorder %s2299_s28, 0  ;;  %s782_s24 = scalar_lea.sflag [#allocation12], %s781_s12 }
 0x789   : > { %p1017_p0 = pnand %p1021_p1, %p2300_p6 }
 0x78b   : > { %1460 = dma.done.wait (!%p1017_p0), %s782_s24, 256  }
 0x78c   : > { %1462 = vsyncadd (!%p1017_p0), %s782_s24, 4294967040  ;;  %s37_s8 = sadd.s32 1, %s1537_s8   ;;  %s2302_s2 = sld [smem:[#allocation30_spill]] }
 0x78d   : > { %p2136_p13 = scmp.ge.s32.totalorder %s37_s8, 42   ;;  %s2303_s15 = sld [smem:[#allocation31_spill]] }
 0x78e   : > { %s2304_s16 = sld [smem:[#allocation51_spill]]  ;;  %s2305_s29 = sld [smem:[#allocation48_spill]] }
 0x78f   : > { %s2306_s20 = sld [smem:[#allocation32_spill]]  ;;  %s2307_s21 = sld [smem:[#allocation33_spill]] }
 0x790   : > { %s2308_s22 = sld [smem:[#allocation46_spill]]  ;;  %s2309_s0 = sld [smem:[#allocation34_spill]] }
 0x791   : > { %s2310_s11 = sld [smem:[#allocation45_spill]]  ;;  %s2311_s26 = sld [smem:[#allocation38_spill]] }
 0x792   : > { %s2312_s27 = sld [smem:[#allocation39_spill]]  ;;  %s2313_s1 = sld [smem:[#allocation40_spill]] }
 0x793   : > { %s2314_s30 = sld [smem:[#allocation41_spill]]  ;;  %s2315_s14 = sld [smem:[#allocation43_spill]] }
 0x794   : > { %s2316_s17 = smov %s1481_s18  ;;  %s2318_s18 = smov %s1485_s19 }
 0x795   : > { %s2319_s19 = smov %s2305_s29  ;;  %s2321_s24 = smov %s1509_s25 }
 0x796   : > { %s2320_s23 = smov %s2309_s0  ;;  %s2323_s28 = smov %s1533_s7 }
 0x797   : > { %s2322_s25 = smov %s2310_s11  ;;  %36 = sbr.rel (!%p2136_p13) target bundleno = 48 (0x30), region = 117 }
 0x798   : > { %s2324_s29 = smov %s2313_s1 }
 0x799   : > { %s2325_s7 = smov %s2315_s14 }
 0x79e   :  { %787 = vsyncpa [#allocation11], 1 }
 0x79f   :  { %789 = vsyncpa [#allocation11 + $0x1], 1 }
 0x7a0   :  { %790 = vsyncpa [#allocation14], 1 }
 0x7a1   :  { %792 = vsyncpa [#allocation14 + $0x1], 1 }
 0x7a2   :  { %793 = vsyncpa [#allocation12], 1 }
 0x7a3   :  { %795 = vsyncpa [#allocation12 + $0x1], 1 }

</bundles_post_ra>
